<compile_context>
chip_gen: v7x
topology: tpu7x:2x2x1
jax: 0.10.0
libtpu: 0.0.40
codegen_flags: <defaults>
</compile_context>

<pallas_src>
import functools
import math

import jax
import jax.numpy as jnp
from jax.experimental import pallas as pl
from jax.experimental.pallas import tpu as pltpu


_SQRT_2_OVER_PI = math.sqrt(2.0 / math.pi)


def _gelu_tanh(x):
    # tanh-form GELU: 0.5*x*(1 + tanh(sqrt(2/pi)*(x + 0.044715*x^3)))
    # transcendental lands on the otherwise-idle EUP slot; ~1e-3 max deviation
    # from exact erf-GELU, well inside the accepted bf16 tolerance.
    inner = _SQRT_2_OVER_PI * (x + 0.044715 * (x * x * x))
    return 0.5 * x * (1.0 + jnp.tanh(inner))


def _transformer_block_kernel(
    x_ref, mask_ref,
    wqkv_ref, bqkv_ref, wo_ref, bo_ref,
    g_sa_ref, b_sa_ref,
    w1_ref, b1_ref, w2_ref, b2_ref,
    g_out_ref, b_out_ref,
    out_ref,
    q_s, k_s, v_s, ctx_s,
    *, n_heads, tq, ffn_chunk,
):
    qi = pl.program_id(1)
    S, D = k_s.shape
    Hf = w1_ref.shape[1]
    dh = D // n_heads
    scale = 1.0 / math.sqrt(dh)   # DistilBERT scales q by 1/sqrt(dim_per_head)

    # ---- fused Q|K|V projection, once per batch; written in D-wide chunks so
    # ---- the f32 transient is (S, D) rather than (S, 3D) ----
    @pl.when(qi == 0)
    def _():
        x_kv = x_ref[0].astype(jnp.bfloat16)                                   # (S, D)
        q = jnp.dot(x_kv, wqkv_ref[:, 0:D],
                    preferred_element_type=jnp.float32) + bqkv_ref[:, 0:D]
        q_s[...] = (q * scale).astype(jnp.bfloat16)
        k = jnp.dot(x_kv, wqkv_ref[:, D:2 * D],
                    preferred_element_type=jnp.float32) + bqkv_ref[:, D:2 * D]
        k_s[...] = k.astype(jnp.bfloat16)
        v = jnp.dot(x_kv, wqkv_ref[:, 2 * D:3 * D],
                    preferred_element_type=jnp.float32) + bqkv_ref[:, 2 * D:3 * D]
        v_s[...] = v.astype(jnp.bfloat16)

    row0 = pl.multiple_of(qi * tq, tq)
    # residual tile sliced from the already-resident full-sequence block
    x_tile = x_ref[0, pl.ds(row0, tq), :].astype(jnp.float32)                  # (TQ, D)
    mask_b = jnp.broadcast_to(mask_ref[0], (tq, S))                            # hoisted

    q_tile = q_s[pl.ds(row0, tq), :]                                           # (TQ, D) bf16

    # ---- multi-head attention: bf16 MXU operands, f32 softmax stats;
    # ---- per-head contexts go straight into a lane-dense (TQ, D) scratch ----
    for h in range(n_heads):                                                   # static unroll
        qh = q_tile[:, h * dh:(h + 1) * dh]
        kh = k_s[:, h * dh:(h + 1) * dh]
        vh = v_s[:, h * dh:(h + 1) * dh]
        s = jax.lax.dot_general(qh, kh, (((1,), (1,)), ((), ())),
                                preferred_element_type=jnp.float32)            # (TQ, S)
        s = s + mask_b
        m = jnp.max(s, axis=-1, keepdims=True)
        e = jnp.exp(s - m)
        w = e * pl.reciprocal(jnp.sum(e, axis=-1, keepdims=True), approx=True)
        ctx_h = jnp.dot(w.astype(jnp.bfloat16), vh,
                        preferred_element_type=jnp.float32)                    # (TQ, dh)
        ctx_s[:, h * dh:(h + 1) * dh] = ctx_h.astype(jnp.bfloat16)

    attn = jnp.dot(ctx_s[...], wo_ref[...],
                   preferred_element_type=jnp.float32) + bo_ref[...]

    def layer_norm(v, g_ref, b_ref):
        mu = jnp.mean(v, axis=-1, keepdims=True)
        var = jnp.mean((v - mu) ** 2, axis=-1, keepdims=True)
        return (v - mu) * jax.lax.rsqrt(var + 1e-12) * g_ref[...] + b_ref[...]

    # ---- sa_layer_norm(attention_output + hidden_states) ----
    h_sa = layer_norm(attn + x_tile, g_sa_ref, b_sa_ref)

    # ---- FFN: lin2(gelu(lin1(x))), chunked over Hf; dropout is an inference no-op ----
    h_sa_bf = h_sa.astype(jnp.bfloat16)
    acc = jnp.broadcast_to(b2_ref[...], (tq, D)).astype(jnp.float32)
    for c in range(0, Hf, ffn_chunk):                                          # static unroll
        f = jnp.dot(h_sa_bf, w1_ref[:, c:c + ffn_chunk],
                    preferred_element_type=jnp.float32) + b1_ref[:, c:c + ffn_chunk]
        f = _gelu_tanh(f)
        acc = acc + jnp.dot(f.astype(jnp.bfloat16), w2_ref[c:c + ffn_chunk, :],
                            preferred_element_type=jnp.float32)

    # ---- output_layer_norm(ffn_output + attention_output) ----
    out_ref[0] = layer_norm(acc + h_sa, g_out_ref, b_out_ref).astype(out_ref.dtype)


def transformer_block(hidden_states, attention_mask, params, n_heads):
    """Returns ((layer_output,), keep_indices=None) like the PyTorch module."""
    B, S0, D = hidden_states.shape
    Hf = params['w1'].shape[0]

    if attention_mask is None:
        attention_mask = jnp.ones((B, S0), jnp.float32)
    attention_mask = attention_mask.astype(jnp.float32)

    # pad long unaligned sequences to a multiple of 128 (padded key columns are
    # masked with -1e9 and padded query rows are sliced off the output)
    if S0 > 128 and S0 % 128 != 0:
        S = ((S0 + 127) // 128) * 128
        hidden_states = jnp.pad(hidden_states, ((0, 0), (0, S - S0), (0, 0)))
        attention_mask = jnp.pad(attention_mask, ((0, 0), (0, S - S0)))
    else:
        S = S0

    try:
        vmem_cap = int(pltpu.get_tpu_info().vmem_capacity_bytes)
    except Exception:
        vmem_cap = 64 * 1024 * 1024        # v7x worst case per TensorCore

    # query-tile size: 256 on 128-MiB-VMEM parts (v5e/v6e) when it divides S,
    # 128 otherwise; tiny sequences use a single tile.
    if S % 256 == 0 and vmem_cap >= 100 * 1024 * 1024:
        TQ = 256
    elif S % 128 == 0:
        TQ = 128
    else:
        TQ = S
    NQ = S // TQ

    HC = 512 if Hf % 512 == 0 else Hf      # FFN chunk width along Hf

    # additive mask: 0 for keep, -1e9 for masked (one vadd, no -inf NaNs)
    mask_add = ((attention_mask - 1.0) * 1e9).reshape(B, 1, S)

    def t(w):  # torch Linear weight (out, in) -> (in, out), bf16 MXU operand
        return jnp.asarray(w, jnp.float32).T.astype(jnp.bfloat16)

    def r(b):  # 1D param -> (1, dim) f32 row (added to f32 accumulators)
        return jnp.asarray(b, jnp.float32).reshape(1, -1)

    # fused Q|K|V weights / biases (single DMA; sliced column-wise in-kernel)
    wqkv = jnp.concatenate([t(params['wq']), t(params['wk']), t(params['wv'])], axis=1)
    bqkv = jnp.concatenate([r(params['bq']), r(params['bk']), r(params['bv'])], axis=1)

    inputs = (
        hidden_states, mask_add,
        wqkv, bqkv,
        t(params['wo']), r(params['bo']),
        r(params['g_sa']), r(params['b_sa']),
        t(params['w1']), r(params['b1']),
        t(params['w2']), r(params['b2']),
        r(params['g_out']), r(params['b_out']),
    )

    def const(shape):
        # block index never changes -> single buffer (halves weight VMEM footprint)
        return pl.BlockSpec(shape, lambda b, q: (0,) * len(shape),
                            pipeline_mode=pl.Buffered(1))

    in_specs = [
        pl.BlockSpec((1, S, D), lambda b, q: (b, 0, 0)),    # full sequence (K/V + residual slices)
        pl.BlockSpec((1, 1, S), lambda b, q: (b, 0, 0)),    # additive attention mask
        const((D, 3 * D)), const((1, 3 * D)),               # fused qkv_lin
        const((D, D)), const((1, D)),                       # out_lin
        const((1, D)), const((1, D)),                       # sa_layer_norm gamma/beta
        const((D, Hf)), const((1, Hf)),                     # ffn lin1
        const((Hf, D)), const((1, D)),                      # ffn lin2
        const((1, D)), const((1, D)),                       # output_layer_norm gamma/beta
    ]

    grid_spec = pltpu.PrefetchScalarGridSpec(
        num_scalar_prefetch=0,
        grid=(B, NQ),
        in_specs=in_specs,
        out_specs=pl.BlockSpec((1, TQ, D), lambda b, q: (b, q, 0)),
        scratch_shapes=[
            pltpu.VMEM((S, D), jnp.bfloat16),    # cached Q (pre-scaled)
            pltpu.VMEM((S, D), jnp.bfloat16),    # cached K
            pltpu.VMEM((S, D), jnp.bfloat16),    # cached V
            pltpu.VMEM((TQ, D), jnp.bfloat16),   # per-tile ctx (column-sliced head stores)
        ],
    )

    # footprint-derived VMEM limit (v7x has only 64 MiB per TensorCore)
    wt_bytes = 2 * (3 * D * D + D * D + 2 * D * Hf)          # bf16 weights, single-buffered
    bias_bytes = 4 * (3 * D + Hf + 6 * D)
    act_bytes = 2 * S * D * 4 + 2 * TQ * D * 4 + 2 * S * 4   # pipelined activations (double-buffered)
    scr_bytes = (3 * S * D + TQ * D) * 2
    transient = 4 * (2 * TQ * S + TQ * HC + S * D + 2 * TQ * D)
    est = wt_bytes + bias_bytes + act_bytes + scr_bytes + transient
    vmem_limit = int(min(max(1.5 * est + (8 << 20), 32 << 20), 0.75 * vmem_cap))

    out = pl.pallas_call(
        functools.partial(_transformer_block_kernel,
                          n_heads=n_heads, tq=TQ, ffn_chunk=HC),
        out_shape=jax.ShapeDtypeStruct((B, S, D), hidden_states.dtype),
        grid_spec=grid_spec,
        compiler_params=pltpu.CompilerParams(
            # batch axis sharded across v7x cores; query-tile axis must stay
            # sequential because K/V scratch is filled at qi == 0.
            # TODO(synk): for B==1 on v7x, precompute QKV outside the kernel so
            # the query-tile axis can be marked "parallel" across both cores.
            dimension_semantics=("parallel", "arbitrary"),
            vmem_limit_bytes=vmem_limit,
        ),
    )(*inputs)

    if S != S0:
        out = out[:, :S0, :]

    # TODO(synk): output_attentions / output_length token-pruning (topk +
    # expand_gather) path is not exercised by the default forward and is left out.
    return (out,), None


def init_params(key, dim, hidden_dim):
    ks = jax.random.split(key, 6)

    def lin(k, out_f, in_f):
        kw, kb = jax.random.split(k)
        w = jax.random.normal(kw, (out_f, in_f), jnp.float32) * 0.02
        b = jax.random.normal(kb, (out_f,), jnp.float32) * 0.02
        return w, b

    p = {}
    p['wq'], p['bq'] = lin(ks[0], dim, dim)
    p['wk'], p['bk'] = lin(ks[1], dim, dim)
    p['wv'], p['bv'] = lin(ks[2], dim, dim)
    p['wo'], p['bo'] = lin(ks[3], dim, dim)
    p['g_sa'] = jnp.ones((dim,), jnp.float32)
    p['b_sa'] = jnp.zeros((dim,), jnp.float32)
    p['w1'], p['b1'] = lin(ks[4], hidden_dim, dim)
    p['w2'], p['b2'] = lin(ks[5], dim, hidden_dim)
    p['g_out'] = jnp.ones((dim,), jnp.float32)
    p['b_out'] = jnp.zeros((dim,), jnp.float32)
    return p


def reference(x, mask, p, n_heads):
    """Pure-JAX (f32) re-statement of the PyTorch forward, for correctness checking."""
    B, S, D = x.shape
    dh = D // n_heads

    def lin(v, w, b):
        return v @ w.T + b

    q = lin(x, p['wq'], p['bq']).reshape(B, S, n_heads, dh).transpose(0, 2, 1, 3)
    k = lin(x, p['wk'], p['bk']).reshape(B, S, n_heads, dh).transpose(0, 2, 1, 3)
    v = lin(x, p['wv'], p['bv']).reshape(B, S, n_heads, dh).transpose(0, 2, 1, 3)
    q = q / math.sqrt(dh)
    scores = jnp.einsum('bhqd,bhkd->bhqk', q, k)
    scores = jnp.where((mask == 0)[:, None, None, :], -jnp.inf, scores)
    w = jax.nn.softmax(scores, axis=-1)
    ctx = jnp.einsum('bhqk,bhkd->bhqd', w, v).transpose(0, 2, 1, 3).reshape(B, S, D)
    attn_out = lin(ctx, p['wo'], p['bo'])

    def ln(v, g, b):
        mu = v.mean(-1, keepdims=True)
        var = ((v - mu) ** 2).mean(-1, keepdims=True)
        return (v - mu) / jnp.sqrt(var + 1e-12) * g + b

    h_sa = ln(attn_out + x, p['g_sa'], p['b_sa'])
    f = lin(h_sa, p['w1'], p['b1'])
    f = jax.nn.gelu(f, approximate=False)
    f = lin(f, p['w2'], p['b2'])
    return ln(f + h_sa, p['g_out'], p['b_out'])


if __name__ == "__main__":
    B, S, D, H, FF = 2, 8, 32, 4, 64   # dim % n_heads == 0
    key = jax.random.PRNGKey(0)
    k_x, k_p = jax.random.split(key)
    x = jax.random.normal(k_x, (B, S, D), jnp.float32)
    mask = jnp.ones((B, S), jnp.float32).at[1, 6:].set(0.0)  # mask last 2 tokens of batch 1
    params = init_params(k_p, D, FF)

    (layer_output,), keep_indices = transformer_block(x, mask, params, H)
    layer_output = jax.block_until_ready(layer_output)

    assert layer_output.shape == (B, S, D)
    ref = reference(x, mask, params, H)
    max_err = float(jnp.max(jnp.abs(layer_output - ref)))
    # bf16 MXU operands + tanh-GELU -> ~1e-3 level deviations from the f32 reference
    assert jnp.allclose(layer_output, ref, atol=3e-2, rtol=3e-2), max_err
    print("KERNEL_OK")
</pallas_src>

<mosaic_0001>
module attributes {stable_mosaic.version = 11 : i64} {
  func.func @_transformer_block_kernel(%arg0: i32, %arg1: i32, %arg2: memref<1x8x32xf32, #tpu.memory_space<vmem>>, %arg3: memref<1x1x8xf32, #tpu.memory_space<vmem>>, %arg4: memref<32x96xbf16, #tpu.memory_space<vmem>>, %arg5: memref<1x96xf32, #tpu.memory_space<vmem>>, %arg6: memref<32x32xbf16, #tpu.memory_space<vmem>>, %arg7: memref<1x32xf32, #tpu.memory_space<vmem>>, %arg8: memref<1x32xf32, #tpu.memory_space<vmem>>, %arg9: memref<1x32xf32, #tpu.memory_space<vmem>>, %arg10: memref<32x64xbf16, #tpu.memory_space<vmem>>, %arg11: memref<1x64xf32, #tpu.memory_space<vmem>>, %arg12: memref<64x32xbf16, #tpu.memory_space<vmem>>, %arg13: memref<1x32xf32, #tpu.memory_space<vmem>>, %arg14: memref<1x32xf32, #tpu.memory_space<vmem>>, %arg15: memref<1x32xf32, #tpu.memory_space<vmem>>, %arg16: memref<1x8x32xf32, #tpu.memory_space<vmem>>, %arg17: memref<8x32xbf16, #tpu.memory_space<vmem>>, %arg18: memref<8x32xbf16, #tpu.memory_space<vmem>>, %arg19: memref<8x32xbf16, #tpu.memory_space<vmem>>, %arg20: memref<8x32xbf16, #tpu.memory_space<vmem>>) attributes {dimension_semantics = [#tpu.dimension_semantics<parallel>, #tpu.dimension_semantics<arbitrary>], iteration_bounds = array<i64: 2, 1>, scalar_prefetch = 0 : i64, scratch_operands = 4 : i64, tpu.core_type = #tpu.core_type<tc>, window_params = [{transform_indices = @transform_0, window_bounds = array<i64: 1, 8, 32>}, {transform_indices = @transform_1, window_bounds = array<i64: 1, 1, 8>}, {pipeline_mode = #tpu.pipeline_mode<synchronous>, transform_indices = @transform_2, window_bounds = array<i64: 32, 96>}, {pipeline_mode = #tpu.pipeline_mode<synchronous>, transform_indices = @transform_3, window_bounds = array<i64: 1, 96>}, {pipeline_mode = #tpu.pipeline_mode<synchronous>, transform_indices = @transform_4, window_bounds = array<i64: 32, 32>}, {pipeline_mode = #tpu.pipeline_mode<synchronous>, transform_indices = @transform_5, window_bounds = array<i64: 1, 32>}, {pipeline_mode = #tpu.pipeline_mode<synchronous>, transform_indices = @transform_6, window_bounds = array<i64: 1, 32>}, {pipeline_mode = #tpu.pipeline_mode<synchronous>, transform_indices = @transform_7, window_bounds = array<i64: 1, 32>}, {pipeline_mode = #tpu.pipeline_mode<synchronous>, transform_indices = @transform_8, window_bounds = array<i64: 32, 64>}, {pipeline_mode = #tpu.pipeline_mode<synchronous>, transform_indices = @transform_9, window_bounds = array<i64: 1, 64>}, {pipeline_mode = #tpu.pipeline_mode<synchronous>, transform_indices = @transform_10, window_bounds = array<i64: 64, 32>}, {pipeline_mode = #tpu.pipeline_mode<synchronous>, transform_indices = @transform_11, window_bounds = array<i64: 1, 32>}, {pipeline_mode = #tpu.pipeline_mode<synchronous>, transform_indices = @transform_12, window_bounds = array<i64: 1, 32>}, {pipeline_mode = #tpu.pipeline_mode<synchronous>, transform_indices = @transform_13, window_bounds = array<i64: 1, 32>}, {transform_indices = @transform_14, window_bounds = array<i64: 1, 8, 32>}]} {
    %c0_i32 = arith.constant 0 : i32
    %0 = arith.cmpi eq, %arg1, %c0_i32 : i32
    %1 = arith.extui %0 : i1 to i32
    %c0_i32_0 = arith.constant 0 : i32
    %2 = arith.cmpi ne, %1, %c0_i32_0 : i32
    scf.if %2 {
      %c0_84 = arith.constant 0 : index
      %c0_85 = arith.constant 0 : index
      %c0_86 = arith.constant 0 : index
      %175 = vector.load %arg2[%c0_84, %c0_85, %c0_86] : memref<1x8x32xf32, #tpu.memory_space<vmem>>, vector<1x8x32xf32>
      %176 = vector.shape_cast %175 : vector<1x8x32xf32> to vector<8x32xf32>
      %177 = arith.truncf %176 : vector<8x32xf32> to vector<8x32xbf16>
      %c0_87 = arith.constant 0 : index
      %c0_88 = arith.constant 0 : index
      %178 = vector.load %arg4[%c0_87, %c0_88] : memref<32x96xbf16, #tpu.memory_space<vmem>>, vector<32x32xbf16>
      %cst_89 = arith.constant dense<0.000000e+00> : vector<8x32xf32>
      %179 = tpu.matmul %177, %178, %cst_89 {dimension_numbers = #tpu.dot_dimension_numbers<[1], [0], [0], [1], [0, 0, 1, 1], [], []>} : vector<8x32xbf16>, vector<32x32xbf16>, vector<8x32xf32> -> vector<8x32xf32>
      %c0_90 = arith.constant 0 : index
      %c0_91 = arith.constant 0 : index
      %180 = vector.load %arg5[%c0_90, %c0_91] : memref<1x96xf32, #tpu.memory_space<vmem>>, vector<1x32xf32>
      %181 = vector.broadcast %180 : vector<1x32xf32> to vector<8x32xf32>
      %182 = arith.addf %179, %181 : vector<8x32xf32>
      %cst_92 = arith.constant 0.353553385 : f32
      %183 = vector.broadcast %cst_92 : f32 to vector<8x32xf32>
      %184 = arith.mulf %182, %183 : vector<8x32xf32>
      %185 = arith.truncf %184 : vector<8x32xf32> to vector<8x32xbf16>
      %c0_93 = arith.constant 0 : index
      %c0_94 = arith.constant 0 : index
      %186 = vector.load %arg17[%c0_93, %c0_94] : memref<8x32xbf16, #tpu.memory_space<vmem>>, vector<8x32xbf16>
      tpu.vector_store %arg17[%c0_93, %c0_94], %185 {strides = array<i32>} : memref<8x32xbf16, #tpu.memory_space<vmem>>, vector<8x32xbf16>,
      %c0_95 = arith.constant 0 : index
      %c32 = arith.constant 32 : index
      %187 = vector.load %arg4[%c0_95, %c32] : memref<32x96xbf16, #tpu.memory_space<vmem>>, vector<32x32xbf16>
      %cst_96 = arith.constant dense<0.000000e+00> : vector<8x32xf32>
      %188 = tpu.matmul %177, %187, %cst_96 {dimension_numbers = #tpu.dot_dimension_numbers<[1], [0], [0], [1], [0, 0, 1, 1], [], []>} : vector<8x32xbf16>, vector<32x32xbf16>, vector<8x32xf32> -> vector<8x32xf32>
      %c0_97 = arith.constant 0 : index
      %c32_98 = arith.constant 32 : index
      %189 = vector.load %arg5[%c0_97, %c32_98] : memref<1x96xf32, #tpu.memory_space<vmem>>, vector<1x32xf32>
      %190 = vector.broadcast %189 : vector<1x32xf32> to vector<8x32xf32>
      %191 = arith.addf %188, %190 : vector<8x32xf32>
      %192 = arith.truncf %191 : vector<8x32xf32> to vector<8x32xbf16>
      %c0_99 = arith.constant 0 : index
      %c0_100 = arith.constant 0 : index
      %193 = vector.load %arg18[%c0_99, %c0_100] : memref<8x32xbf16, #tpu.memory_space<vmem>>, vector<8x32xbf16>
      tpu.vector_store %arg18[%c0_99, %c0_100], %192 {strides = array<i32>} : memref<8x32xbf16, #tpu.memory_space<vmem>>, vector<8x32xbf16>,
      %c0_101 = arith.constant 0 : index
      %c64 = arith.constant 64 : index
      %194 = vector.load %arg4[%c0_101, %c64] : memref<32x96xbf16, #tpu.memory_space<vmem>>, vector<32x32xbf16>
      %cst_102 = arith.constant dense<0.000000e+00> : vector<8x32xf32>
      %195 = tpu.matmul %177, %194, %cst_102 {dimension_numbers = #tpu.dot_dimension_numbers<[1], [0], [0], [1], [0, 0, 1, 1], [], []>} : vector<8x32xbf16>, vector<32x32xbf16>, vector<8x32xf32> -> vector<8x32xf32>
      %c0_103 = arith.constant 0 : index
      %c64_104 = arith.constant 64 : index
      %196 = vector.load %arg5[%c0_103, %c64_104] : memref<1x96xf32, #tpu.memory_space<vmem>>, vector<1x32xf32>
      %197 = vector.broadcast %196 : vector<1x32xf32> to vector<8x32xf32>
      %198 = arith.addf %195, %197 : vector<8x32xf32>
      %199 = arith.truncf %198 : vector<8x32xf32> to vector<8x32xbf16>
      %c0_105 = arith.constant 0 : index
      %c0_106 = arith.constant 0 : index
      %200 = vector.load %arg19[%c0_105, %c0_106] : memref<8x32xbf16, #tpu.memory_space<vmem>>, vector<8x32xbf16>
      tpu.vector_store %arg19[%c0_105, %c0_106], %199 {strides = array<i32>} : memref<8x32xbf16, #tpu.memory_space<vmem>>, vector<8x32xbf16>,
    } else {
    }
    %c8_i32 = arith.constant 8 : i32
    %3 = arith.muli %arg1, %c8_i32 : i32
    %4 = tpu.assume_multiple %3, 8 : i32
    %c0 = arith.constant 0 : index
    %5 = arith.index_cast %4 : i32 to index
    %c0_1 = arith.constant 0 : index
    %6 = vector.load %arg2[%c0, %5, %c0_1] : memref<1x8x32xf32, #tpu.memory_space<vmem>>, vector<1x8x32xf32>
    %7 = vector.shape_cast %6 : vector<1x8x32xf32> to vector<8x32xf32>
    %c0_2 = arith.constant 0 : index
    %c0_3 = arith.constant 0 : index
    %c0_4 = arith.constant 0 : index
    %8 = vector.load %arg3[%c0_2, %c0_3, %c0_4] : memref<1x1x8xf32, #tpu.memory_space<vmem>>, vector<1x1x8xf32>
    %9 = vector.shape_cast %8 : vector<1x1x8xf32> to vector<1x8xf32>
    %10 = vector.shape_cast %9 : vector<1x8xf32> to vector<1x8xf32>
    %11 = vector.broadcast %10 : vector<1x8xf32> to vector<8x8xf32>
    %12 = arith.index_cast %4 : i32 to index
    %c0_5 = arith.constant 0 : index
    %13 = vector.load %arg17[%12, %c0_5] : memref<8x32xbf16, #tpu.memory_space<vmem>>, vector<8x32xbf16>
    %14 = vector.extract_strided_slice %13 {offsets = [0, 0], sizes = [8, 8], strides = [1, 1]} : vector<8x32xbf16> to vector<8x8xbf16>
    %c0_6 = arith.constant 0 : index
    %c0_7 = arith.constant 0 : index
    %15 = vector.load %arg18[%c0_6, %c0_7] : memref<8x32xbf16, #tpu.memory_space<vmem>>, vector<8x8xbf16>
    %c0_8 = arith.constant 0 : index
    %c0_9 = arith.constant 0 : index
    %16 = vector.load %arg19[%c0_8, %c0_9] : memref<8x32xbf16, #tpu.memory_space<vmem>>, vector<8x8xbf16>
    %cst = arith.constant dense<0.000000e+00> : vector<8x8xf32>
    %17 = tpu.matmul %14, %15, %cst {dimension_numbers = #tpu.dot_dimension_numbers<[1], [1], [0], [0], [0, 0, 1, 0], [], []>} : vector<8x8xbf16>, vector<8x8xbf16>, vector<8x8xf32> -> vector<8x8xf32>
    %18 = arith.addf %17, %11 : vector<8x8xf32>
    %cst_10 = arith.constant dense<0xFF800000> : vector<8xf32>
    %19 = vector.multi_reduction <maximumf>, %18, %cst_10 [1] : vector<8x8xf32> to vector<8xf32>
    %20 = vector.shape_cast %19 : vector<8xf32> to vector<8x1xf32>
    %21 = vector.broadcast %20 : vector<8x1xf32> to vector<8x8xf32>
    %22 = arith.subf %18, %21 : vector<8x8xf32>
    %23 = math.exp %22 : vector<8x8xf32>
    %cst_11 = arith.constant dense<0.000000e+00> : vector<8xf32>
    %24 = vector.multi_reduction <add>, %23, %cst_11 [1] : vector<8x8xf32> to vector<8xf32>
    %25 = vector.shape_cast %24 : vector<8xf32> to vector<8x1xf32>
    %26 = tpu.reciprocal %25 {approx = true} : vector<8x1xf32> -> vector<8x1xf32>
    %27 = vector.broadcast %26 : vector<8x1xf32> to vector<8x8xf32>
    %28 = arith.mulf %23, %27 : vector<8x8xf32>
    %29 = arith.truncf %28 : vector<8x8xf32> to vector<8x8xbf16>
    %cst_12 = arith.constant dense<0.000000e+00> : vector<8x8xf32>
    %30 = tpu.matmul %29, %16, %cst_12 {dimension_numbers = #tpu.dot_dimension_numbers<[1], [0], [0], [1], [0, 0, 1, 1], [], []>} : vector<8x8xbf16>, vector<8x8xbf16>, vector<8x8xf32> -> vector<8x8xf32>
    %31 = arith.truncf %30 : vector<8x8xf32> to vector<8x8xbf16>
    %c0_13 = arith.constant 0 : index
    %c0_14 = arith.constant 0 : index
    %32 = vector.load %arg20[%c0_13, %c0_14] : memref<8x32xbf16, #tpu.memory_space<vmem>>, vector<8x8xbf16>
    tpu.vector_store %arg20[%c0_13, %c0_14], %31 {strides = array<i32>} : memref<8x32xbf16, #tpu.memory_space<vmem>>, vector<8x8xbf16>,
    %33 = vector.extract_strided_slice %13 {offsets = [0, 8], sizes = [8, 8], strides = [1, 1]} : vector<8x32xbf16> to vector<8x8xbf16>
    %c0_15 = arith.constant 0 : index
    %c8 = arith.constant 8 : index
    %34 = vector.load %arg18[%c0_15, %c8] : memref<8x32xbf16, #tpu.memory_space<vmem>>, vector<8x8xbf16>
    %c0_16 = arith.constant 0 : index
    %c8_17 = arith.constant 8 : index
    %35 = vector.load %arg19[%c0_16, %c8_17] : memref<8x32xbf16, #tpu.memory_space<vmem>>, vector<8x8xbf16>
    %cst_18 = arith.constant dense<0.000000e+00> : vector<8x8xf32>
    %36 = tpu.matmul %33, %34, %cst_18 {dimension_numbers = #tpu.dot_dimension_numbers<[1], [1], [0], [0], [0, 0, 1, 0], [], []>} : vector<8x8xbf16>, vector<8x8xbf16>, vector<8x8xf32> -> vector<8x8xf32>
    %37 = arith.addf %36, %11 : vector<8x8xf32>
    %cst_19 = arith.constant dense<0xFF800000> : vector<8xf32>
    %38 = vector.multi_reduction <maximumf>, %37, %cst_19 [1] : vector<8x8xf32> to vector<8xf32>
    %39 = vector.shape_cast %38 : vector<8xf32> to vector<8x1xf32>
    %40 = vector.broadcast %39 : vector<8x1xf32> to vector<8x8xf32>
    %41 = arith.subf %37, %40 : vector<8x8xf32>
    %42 = math.exp %41 : vector<8x8xf32>
    %cst_20 = arith.constant dense<0.000000e+00> : vector<8xf32>
    %43 = vector.multi_reduction <add>, %42, %cst_20 [1] : vector<8x8xf32> to vector<8xf32>
    %44 = vector.shape_cast %43 : vector<8xf32> to vector<8x1xf32>
    %45 = tpu.reciprocal %44 {approx = true} : vector<8x1xf32> -> vector<8x1xf32>
    %46 = vector.broadcast %45 : vector<8x1xf32> to vector<8x8xf32>
    %47 = arith.mulf %42, %46 : vector<8x8xf32>
    %48 = arith.truncf %47 : vector<8x8xf32> to vector<8x8xbf16>
    %cst_21 = arith.constant dense<0.000000e+00> : vector<8x8xf32>
    %49 = tpu.matmul %48, %35, %cst_21 {dimension_numbers = #tpu.dot_dimension_numbers<[1], [0], [0], [1], [0, 0, 1, 1], [], []>} : vector<8x8xbf16>, vector<8x8xbf16>, vector<8x8xf32> -> vector<8x8xf32>
    %50 = arith.truncf %49 : vector<8x8xf32> to vector<8x8xbf16>
    %c0_22 = arith.constant 0 : index
    %c8_23 = arith.constant 8 : index
    %51 = vector.load %arg20[%c0_22, %c8_23] : memref<8x32xbf16, #tpu.memory_space<vmem>>, vector<8x8xbf16>
    tpu.vector_store %arg20[%c0_22, %c8_23], %50 {strides = array<i32>} : memref<8x32xbf16, #tpu.memory_space<vmem>>, vector<8x8xbf16>,
    %52 = vector.extract_strided_slice %13 {offsets = [0, 16], sizes = [8, 8], strides = [1, 1]} : vector<8x32xbf16> to vector<8x8xbf16>
    %c0_24 = arith.constant 0 : index
    %c16 = arith.constant 16 : index
    %53 = vector.load %arg18[%c0_24, %c16] : memref<8x32xbf16, #tpu.memory_space<vmem>>, vector<8x8xbf16>
    %c0_25 = arith.constant 0 : index
    %c16_26 = arith.constant 16 : index
    %54 = vector.load %arg19[%c0_25, %c16_26] : memref<8x32xbf16, #tpu.memory_space<vmem>>, vector<8x8xbf16>
    %cst_27 = arith.constant dense<0.000000e+00> : vector<8x8xf32>
    %55 = tpu.matmul %52, %53, %cst_27 {dimension_numbers = #tpu.dot_dimension_numbers<[1], [1], [0], [0], [0, 0, 1, 0], [], []>} : vector<8x8xbf16>, vector<8x8xbf16>, vector<8x8xf32> -> vector<8x8xf32>
    %56 = arith.addf %55, %11 : vector<8x8xf32>
    %cst_28 = arith.constant dense<0xFF800000> : vector<8xf32>
    %57 = vector.multi_reduction <maximumf>, %56, %cst_28 [1] : vector<8x8xf32> to vector<8xf32>
    %58 = vector.shape_cast %57 : vector<8xf32> to vector<8x1xf32>
    %59 = vector.broadcast %58 : vector<8x1xf32> to vector<8x8xf32>
    %60 = arith.subf %56, %59 : vector<8x8xf32>
    %61 = math.exp %60 : vector<8x8xf32>
    %cst_29 = arith.constant dense<0.000000e+00> : vector<8xf32>
    %62 = vector.multi_reduction <add>, %61, %cst_29 [1] : vector<8x8xf32> to vector<8xf32>
    %63 = vector.shape_cast %62 : vector<8xf32> to vector<8x1xf32>
    %64 = tpu.reciprocal %63 {approx = true} : vector<8x1xf32> -> vector<8x1xf32>
    %65 = vector.broadcast %64 : vector<8x1xf32> to vector<8x8xf32>
    %66 = arith.mulf %61, %65 : vector<8x8xf32>
    %67 = arith.truncf %66 : vector<8x8xf32> to vector<8x8xbf16>
    %cst_30 = arith.constant dense<0.000000e+00> : vector<8x8xf32>
    %68 = tpu.matmul %67, %54, %cst_30 {dimension_numbers = #tpu.dot_dimension_numbers<[1], [0], [0], [1], [0, 0, 1, 1], [], []>} : vector<8x8xbf16>, vector<8x8xbf16>, vector<8x8xf32> -> vector<8x8xf32>
    %69 = arith.truncf %68 : vector<8x8xf32> to vector<8x8xbf16>
    %c0_31 = arith.constant 0 : index
    %c16_32 = arith.constant 16 : index
    %70 = vector.load %arg20[%c0_31, %c16_32] : memref<8x32xbf16, #tpu.memory_space<vmem>>, vector<8x8xbf16>
    tpu.vector_store %arg20[%c0_31, %c16_32], %69 {strides = array<i32>} : memref<8x32xbf16, #tpu.memory_space<vmem>>, vector<8x8xbf16>,
    %71 = vector.extract_strided_slice %13 {offsets = [0, 24], sizes = [8, 8], strides = [1, 1]} : vector<8x32xbf16> to vector<8x8xbf16>
    %c0_33 = arith.constant 0 : index
    %c24 = arith.constant 24 : index
    %72 = vector.load %arg18[%c0_33, %c24] : memref<8x32xbf16, #tpu.memory_space<vmem>>, vector<8x8xbf16>
    %c0_34 = arith.constant 0 : index
    %c24_35 = arith.constant 24 : index
    %73 = vector.load %arg19[%c0_34, %c24_35] : memref<8x32xbf16, #tpu.memory_space<vmem>>, vector<8x8xbf16>
    %cst_36 = arith.constant dense<0.000000e+00> : vector<8x8xf32>
    %74 = tpu.matmul %71, %72, %cst_36 {dimension_numbers = #tpu.dot_dimension_numbers<[1], [1], [0], [0], [0, 0, 1, 0], [], []>} : vector<8x8xbf16>, vector<8x8xbf16>, vector<8x8xf32> -> vector<8x8xf32>
    %75 = arith.addf %74, %11 : vector<8x8xf32>
    %cst_37 = arith.constant dense<0xFF800000> : vector<8xf32>
    %76 = vector.multi_reduction <maximumf>, %75, %cst_37 [1] : vector<8x8xf32> to vector<8xf32>
    %77 = vector.shape_cast %76 : vector<8xf32> to vector<8x1xf32>
    %78 = vector.broadcast %77 : vector<8x1xf32> to vector<8x8xf32>
    %79 = arith.subf %75, %78 : vector<8x8xf32>
    %80 = math.exp %79 : vector<8x8xf32>
    %cst_38 = arith.constant dense<0.000000e+00> : vector<8xf32>
    %81 = vector.multi_reduction <add>, %80, %cst_38 [1] : vector<8x8xf32> to vector<8xf32>
    %82 = vector.shape_cast %81 : vector<8xf32> to vector<8x1xf32>
    %83 = tpu.reciprocal %82 {approx = true} : vector<8x1xf32> -> vector<8x1xf32>
    %84 = vector.broadcast %83 : vector<8x1xf32> to vector<8x8xf32>
    %85 = arith.mulf %80, %84 : vector<8x8xf32>
    %86 = arith.truncf %85 : vector<8x8xf32> to vector<8x8xbf16>
    %cst_39 = arith.constant dense<0.000000e+00> : vector<8x8xf32>
    %87 = tpu.matmul %86, %73, %cst_39 {dimension_numbers = #tpu.dot_dimension_numbers<[1], [0], [0], [1], [0, 0, 1, 1], [], []>} : vector<8x8xbf16>, vector<8x8xbf16>, vector<8x8xf32> -> vector<8x8xf32>
    %88 = arith.truncf %87 : vector<8x8xf32> to vector<8x8xbf16>
    %c0_40 = arith.constant 0 : index
    %c24_41 = arith.constant 24 : index
    %89 = vector.load %arg20[%c0_40, %c24_41] : memref<8x32xbf16, #tpu.memory_space<vmem>>, vector<8x8xbf16>
    tpu.vector_store %arg20[%c0_40, %c24_41], %88 {strides = array<i32>} : memref<8x32xbf16, #tpu.memory_space<vmem>>, vector<8x8xbf16>,
    %c0_42 = arith.constant 0 : index
    %c0_43 = arith.constant 0 : index
    %90 = vector.load %arg20[%c0_42, %c0_43] : memref<8x32xbf16, #tpu.memory_space<vmem>>, vector<8x32xbf16>
    %c0_44 = arith.constant 0 : index
    %c0_45 = arith.constant 0 : index
    %91 = vector.load %arg6[%c0_44, %c0_45] : memref<32x32xbf16, #tpu.memory_space<vmem>>, vector<32x32xbf16>
    %cst_46 = arith.constant dense<0.000000e+00> : vector<8x32xf32>
    %92 = tpu.matmul %90, %91, %cst_46 {dimension_numbers = #tpu.dot_dimension_numbers<[1], [0], [0], [1], [0, 0, 1, 1], [], []>} : vector<8x32xbf16>, vector<32x32xbf16>, vector<8x32xf32> -> vector<8x32xf32>
    %c0_47 = arith.constant 0 : index
    %c0_48 = arith.constant 0 : index
    %93 = vector.load %arg7[%c0_47, %c0_48] : memref<1x32xf32, #tpu.memory_space<vmem>>, vector<1x32xf32>
    %94 = vector.broadcast %93 : vector<1x32xf32> to vector<8x32xf32>
    %95 = arith.addf %92, %94 : vector<8x32xf32>
    %96 = arith.addf %95, %7 : vector<8x32xf32>
    %cst_49 = arith.constant dense<0.000000e+00> : vector<8xf32>
    %97 = vector.multi_reduction <add>, %96, %cst_49 [1] : vector<8x32xf32> to vector<8xf32>
    %98 = vector.shape_cast %97 : vector<8xf32> to vector<8x1xf32>
    %cst_50 = arith.constant 3.200000e+01 : f32
    %99 = vector.broadcast %cst_50 : f32 to vector<8x1xf32>
    %100 = arith.divf %98, %99 : vector<8x1xf32>
    %101 = vector.broadcast %100 : vector<8x1xf32> to vector<8x32xf32>
    %102 = arith.subf %96, %101 : vector<8x32xf32>
    %103 = arith.mulf %102, %102 : vector<8x32xf32>
    %cst_51 = arith.constant dense<0.000000e+00> : vector<8xf32>
    %104 = vector.multi_reduction <add>, %103, %cst_51 [1] : vector<8x32xf32> to vector<8xf32>
    %105 = vector.shape_cast %104 : vector<8xf32> to vector<8x1xf32>
    %cst_52 = arith.constant 3.200000e+01 : f32
    %106 = vector.broadcast %cst_52 : f32 to vector<8x1xf32>
    %107 = arith.divf %105, %106 : vector<8x1xf32>
    %108 = vector.broadcast %100 : vector<8x1xf32> to vector<8x32xf32>
    %109 = arith.subf %96, %108 : vector<8x32xf32>
    %cst_53 = arith.constant 9.99999996E-13 : f32
    %110 = vector.broadcast %cst_53 : f32 to vector<8x1xf32>
    %111 = arith.addf %107, %110 : vector<8x1xf32>
    %112 = math.rsqrt %111 : vector<8x1xf32>
    %113 = vector.broadcast %112 : vector<8x1xf32> to vector<8x32xf32>
    %114 = arith.mulf %109, %113 : vector<8x32xf32>
    %c0_54 = arith.constant 0 : index
    %c0_55 = arith.constant 0 : index
    %115 = vector.load %arg8[%c0_54, %c0_55] : memref<1x32xf32, #tpu.memory_space<vmem>>, vector<1x32xf32>
    %116 = vector.broadcast %115 : vector<1x32xf32> to vector<8x32xf32>
    %117 = arith.mulf %114, %116 : vector<8x32xf32>
    %c0_56 = arith.constant 0 : index
    %c0_57 = arith.constant 0 : index
    %118 = vector.load %arg9[%c0_56, %c0_57] : memref<1x32xf32, #tpu.memory_space<vmem>>, vector<1x32xf32>
    %119 = vector.broadcast %118 : vector<1x32xf32> to vector<8x32xf32>
    %120 = arith.addf %117, %119 : vector<8x32xf32>
    %121 = arith.truncf %120 : vector<8x32xf32> to vector<8x32xbf16>
    %c0_58 = arith.constant 0 : index
    %c0_59 = arith.constant 0 : index
    %122 = vector.load %arg13[%c0_58, %c0_59] : memref<1x32xf32, #tpu.memory_space<vmem>>, vector<1x32xf32>
    %123 = vector.shape_cast %122 : vector<1x32xf32> to vector<1x32xf32>
    %124 = vector.broadcast %123 : vector<1x32xf32> to vector<8x32xf32>
    %c0_60 = arith.constant 0 : index
    %c0_61 = arith.constant 0 : index
    %125 = vector.load %arg10[%c0_60, %c0_61] : memref<32x64xbf16, #tpu.memory_space<vmem>>, vector<32x64xbf16>
    %cst_62 = arith.constant dense<0.000000e+00> : vector<8x64xf32>
    %126 = tpu.matmul %121, %125, %cst_62 {dimension_numbers = #tpu.dot_dimension_numbers<[1], [0], [0], [1], [0, 0, 1, 1], [], []>} : vector<8x32xbf16>, vector<32x64xbf16>, vector<8x64xf32> -> vector<8x64xf32>
    %c0_63 = arith.constant 0 : index
    %c0_64 = arith.constant 0 : index
    %127 = vector.load %arg11[%c0_63, %c0_64] : memref<1x64xf32, #tpu.memory_space<vmem>>, vector<1x64xf32>
    %128 = vector.broadcast %127 : vector<1x64xf32> to vector<8x64xf32>
    %129 = arith.addf %126, %128 : vector<8x64xf32>
    %130 = arith.mulf %129, %129 : vector<8x64xf32>
    %131 = arith.mulf %130, %129 : vector<8x64xf32>
    %cst_65 = arith.constant 4.471500e-02 : f32
    %132 = vector.broadcast %cst_65 : f32 to vector<8x64xf32>
    %133 = arith.mulf %132, %131 : vector<8x64xf32>
    %134 = arith.addf %129, %133 : vector<8x64xf32>
    %cst_66 = arith.constant 0.797884583 : f32
    %135 = vector.broadcast %cst_66 : f32 to vector<8x64xf32>
    %136 = arith.mulf %135, %134 : vector<8x64xf32>
    %cst_67 = arith.constant 5.000000e-01 : f32
    %137 = vector.broadcast %cst_67 : f32 to vector<8x64xf32>
    %138 = arith.mulf %137, %129 : vector<8x64xf32>
    %139 = math.tanh %136 : vector<8x64xf32>
    %cst_68 = arith.constant 1.000000e+00 : f32
    %140 = vector.broadcast %cst_68 : f32 to vector<8x64xf32>
    %141 = arith.addf %140, %139 : vector<8x64xf32>
    %142 = arith.mulf %138, %141 : vector<8x64xf32>
    %143 = arith.truncf %142 : vector<8x64xf32> to vector<8x64xbf16>
    %c0_69 = arith.constant 0 : index
    %c0_70 = arith.constant 0 : index
    %144 = vector.load %arg12[%c0_69, %c0_70] : memref<64x32xbf16, #tpu.memory_space<vmem>>, vector<64x32xbf16>
    %cst_71 = arith.constant dense<0.000000e+00> : vector<8x32xf32>
    %145 = tpu.matmul %143, %144, %cst_71 {dimension_numbers = #tpu.dot_dimension_numbers<[1], [0], [0], [1], [0, 0, 1, 1], [], []>} : vector<8x64xbf16>, vector<64x32xbf16>, vector<8x32xf32> -> vector<8x32xf32>
    %146 = arith.addf %124, %145 : vector<8x32xf32>
    %147 = arith.addf %146, %120 : vector<8x32xf32>
    %cst_72 = arith.constant dense<0.000000e+00> : vector<8xf32>
    %148 = vector.multi_reduction <add>, %147, %cst_72 [1] : vector<8x32xf32> to vector<8xf32>
    %149 = vector.shape_cast %148 : vector<8xf32> to vector<8x1xf32>
    %cst_73 = arith.constant 3.200000e+01 : f32
    %150 = vector.broadcast %cst_73 : f32 to vector<8x1xf32>
    %151 = arith.divf %149, %150 : vector<8x1xf32>
    %152 = vector.broadcast %151 : vector<8x1xf32> to vector<8x32xf32>
    %153 = arith.subf %147, %152 : vector<8x32xf32>
    %154 = arith.mulf %153, %153 : vector<8x32xf32>
    %cst_74 = arith.constant dense<0.000000e+00> : vector<8xf32>
    %155 = vector.multi_reduction <add>, %154, %cst_74 [1] : vector<8x32xf32> to vector<8xf32>
    %156 = vector.shape_cast %155 : vector<8xf32> to vector<8x1xf32>
    %cst_75 = arith.constant 3.200000e+01 : f32
    %157 = vector.broadcast %cst_75 : f32 to vector<8x1xf32>
    %158 = arith.divf %156, %157 : vector<8x1xf32>
    %159 = vector.broadcast %151 : vector<8x1xf32> to vector<8x32xf32>
    %160 = arith.subf %147, %159 : vector<8x32xf32>
    %cst_76 = arith.constant 9.99999996E-13 : f32
    %161 = vector.broadcast %cst_76 : f32 to vector<8x1xf32>
    %162 = arith.addf %158, %161 : vector<8x1xf32>
    %163 = math.rsqrt %162 : vector<8x1xf32>
    %164 = vector.broadcast %163 : vector<8x1xf32> to vector<8x32xf32>
    %165 = arith.mulf %160, %164 : vector<8x32xf32>
    %c0_77 = arith.constant 0 : index
    %c0_78 = arith.constant 0 : index
    %166 = vector.load %arg14[%c0_77, %c0_78] : memref<1x32xf32, #tpu.memory_space<vmem>>, vector<1x32xf32>
    %167 = vector.broadcast %166 : vector<1x32xf32> to vector<8x32xf32>
    %168 = arith.mulf %165, %167 : vector<8x32xf32>
    %c0_79 = arith.constant 0 : index
    %c0_80 = arith.constant 0 : index
    %169 = vector.load %arg15[%c0_79, %c0_80] : memref<1x32xf32, #tpu.memory_space<vmem>>, vector<1x32xf32>
    %170 = vector.broadcast %169 : vector<1x32xf32> to vector<8x32xf32>
    %171 = arith.addf %168, %170 : vector<8x32xf32>
    %c0_81 = arith.constant 0 : index
    %c0_82 = arith.constant 0 : index
    %c0_83 = arith.constant 0 : index
    %172 = vector.load %arg16[%c0_81, %c0_82, %c0_83] : memref<1x8x32xf32, #tpu.memory_space<vmem>>, vector<1x8x32xf32>
    %173 = vector.shape_cast %172 : vector<1x8x32xf32> to vector<8x32xf32>
    %174 = vector.shape_cast %171 : vector<8x32xf32> to vector<1x8x32xf32>
    tpu.vector_store %arg16[%c0_81, %c0_82, %c0_83], %174 {strides = array<i32>} : memref<1x8x32xf32, #tpu.memory_space<vmem>>, vector<1x8x32xf32>,
    return
  }
  func.func @transform_0(%arg0: i32, %arg1: i32) -> (i32, i32, i32) {
    %c0_i32 = arith.constant 0 : i32
    %c0_i32_0 = arith.constant 0 : i32
    %c0_i32_1 = arith.constant 0 : i32
    return %arg0, %c0_i32, %c0_i32_0 : i32, i32, i32
  }
  func.func @transform_1(%arg0: i32, %arg1: i32) -> (i32, i32, i32) {
    %c0_i32 = arith.constant 0 : i32
    %c0_i32_0 = arith.constant 0 : i32
    %c0_i32_1 = arith.constant 0 : i32
    return %arg0, %c0_i32, %c0_i32_0 : i32, i32, i32
  }
  func.func @transform_2(%arg0: i32, %arg1: i32) -> (i32, i32) {
    %c0_i32 = arith.constant 0 : i32
    %c0_i32_0 = arith.constant 0 : i32
    %c0_i32_1 = arith.constant 0 : i32
    return %c0_i32, %c0_i32_0 : i32, i32
  }
  func.func @transform_3(%arg0: i32, %arg1: i32) -> (i32, i32) {
    %c0_i32 = arith.constant 0 : i32
    %c0_i32_0 = arith.constant 0 : i32
    %c0_i32_1 = arith.constant 0 : i32
    return %c0_i32, %c0_i32_0 : i32, i32
  }
  func.func @transform_4(%arg0: i32, %arg1: i32) -> (i32, i32) {
    %c0_i32 = arith.constant 0 : i32
    %c0_i32_0 = arith.constant 0 : i32
    %c0_i32_1 = arith.constant 0 : i32
    return %c0_i32, %c0_i32_0 : i32, i32
  }
  func.func @transform_5(%arg0: i32, %arg1: i32) -> (i32, i32) {
    %c0_i32 = arith.constant 0 : i32
    %c0_i32_0 = arith.constant 0 : i32
    %c0_i32_1 = arith.constant 0 : i32
    return %c0_i32, %c0_i32_0 : i32, i32
  }
  func.func @transform_6(%arg0: i32, %arg1: i32) -> (i32, i32) {
    %c0_i32 = arith.constant 0 : i32
    %c0_i32_0 = arith.constant 0 : i32
    %c0_i32_1 = arith.constant 0 : i32
    return %c0_i32, %c0_i32_0 : i32, i32
  }
  func.func @transform_7(%arg0: i32, %arg1: i32) -> (i32, i32) {
    %c0_i32 = arith.constant 0 : i32
    %c0_i32_0 = arith.constant 0 : i32
    %c0_i32_1 = arith.constant 0 : i32
    return %c0_i32, %c0_i32_0 : i32, i32
  }
  func.func @transform_8(%arg0: i32, %arg1: i32) -> (i32, i32) {
    %c0_i32 = arith.constant 0 : i32
    %c0_i32_0 = arith.constant 0 : i32
    %c0_i32_1 = arith.constant 0 : i32
    return %c0_i32, %c0_i32_0 : i32, i32
  }
  func.func @transform_9(%arg0: i32, %arg1: i32) -> (i32, i32) {
    %c0_i32 = arith.constant 0 : i32
    %c0_i32_0 = arith.constant 0 : i32
    %c0_i32_1 = arith.constant 0 : i32
    return %c0_i32, %c0_i32_0 : i32, i32
  }
  func.func @transform_10(%arg0: i32, %arg1: i32) -> (i32, i32) {
    %c0_i32 = arith.constant 0 : i32
    %c0_i32_0 = arith.constant 0 : i32
    %c0_i32_1 = arith.constant 0 : i32
    return %c0_i32, %c0_i32_0 : i32, i32
  }
  func.func @transform_11(%arg0: i32, %arg1: i32) -> (i32, i32) {
    %c0_i32 = arith.constant 0 : i32
    %c0_i32_0 = arith.constant 0 : i32
    %c0_i32_1 = arith.constant 0 : i32
    return %c0_i32, %c0_i32_0 : i32, i32
  }
  func.func @transform_12(%arg0: i32, %arg1: i32) -> (i32, i32) {
    %c0_i32 = arith.constant 0 : i32
    %c0_i32_0 = arith.constant 0 : i32
    %c0_i32_1 = arith.constant 0 : i32
    return %c0_i32, %c0_i32_0 : i32, i32
  }
  func.func @transform_13(%arg0: i32, %arg1: i32) -> (i32, i32) {
    %c0_i32 = arith.constant 0 : i32
    %c0_i32_0 = arith.constant 0 : i32
    %c0_i32_1 = arith.constant 0 : i32
    return %c0_i32, %c0_i32_0 : i32, i32
  }
  func.func @transform_14(%arg0: i32, %arg1: i32) -> (i32, i32, i32) {
    %c0_i32 = arith.constant 0 : i32
    %c0_i32_0 = arith.constant 0 : i32
    return %arg0, %arg1, %c0_i32 : i32, i32, i32
  }
}

</mosaic_0001>

<bundles_post_ra>
// kernel: tpu_custom_call.1
= control target key start
LH: loop header
LB: loop body
LE: loop exit
PB: predicated region body
PF: predicated region fallthrough
CT: control target
= control target key end

     0   :  { %s2489_s0 = inlined_call_operand.vmem [shape: f32[2,8,32], index: 0, kind: input, shape index: {}]   ;;  %s2490_s1 = inlined_call_operand.vmem [shape: f32[2,1,8], index: 1, kind: input, shape index: {}]   ;;  %s2491_s2 = inlined_call_operand.vmem [shape: bf16[32,96], index: 2, kind: input, shape index: {}]   ;;  %s2492_s3 = inlined_call_operand.vmem [shape: f32[1,96], index: 3, kind: input, shape index: {}]   ;;  %s2493_s4 = inlined_call_operand.vmem [shape: bf16[32,32], index: 4, kind: input, shape index: {}]   ;;  %s2494_s5 = inlined_call_operand.vmem [shape: f32[1,32], index: 5, kind: input, shape index: {}]   ;;  %s2495_s6 = inlined_call_operand.vmem [shape: f32[1,32], index: 6, kind: input, shape index: {}]   ;;  %s2496_s7 = inlined_call_operand.vmem [shape: f32[1,32], index: 7, kind: input, shape index: {}]   ;;  %s2497_s8 = inlined_call_operand.hbm [shape: bf16[32,64], index: 8, kind: input, shape index: {}]   ;;  %s2498_s9 = inlined_call_operand.vmem [shape: f32[1,64], index: 9, kind: input, shape index: {}]   ;;  %s2499_s10 = inlined_call_operand.vmem [shape: bf16[64,32], index: 10, kind: input, shape index: {}]   ;;  %s2500_s11 = inlined_call_operand.vmem [shape: f32[1,32], index: 11, kind: input, shape index: {}]   ;;  %s2501_s12 = inlined_call_operand.vmem [shape: f32[1,32], index: 12, kind: input, shape index: {}]   ;;  %s2502_s13 = inlined_call_operand.vmem [shape: f32[1,32], index: 13, kind: input, shape index: {}]   ;;  %s2503_s14 = inlined_call_operand.hbm [shape: f32[2,8,32], index: 14, kind: output, shape index: {}]  }
   0x1   :  { %2515 = sst [smem:[#allocation19_spill]] %s2497_s8 }
   0x2   :  { %19 = vsyncpa [#allocation7], 0 }
   0x3   :  { %20 = vsyncpa [#allocation8], 0 }
   0x4   :  { %22 = vsyncpa [#allocation8 + $0x1], 0  ;;  %s2158_s29 = smov 0   ;;  %s2160_s30 = smov 0  }
   0x5   :  { %s2162_s15 = smov 0   ;;  %s2164_s16 = smov 0  }
   0x6   :  { %s2166_s17 = smov 0   ;;  %s2168_s18 = smov 0  }
   0x7 LB: > { %2516 = sst [smem:[#allocation12_spill]] %s2047_s29  ;;  %s1635_s19 = sadd.s32 4294967295, %s2067_s18   ;;  %s2067_s18 = sphi %s2168_s18, %s28_s18   ;;  %s2063_s17 = sphi %s2166_s17, %s2539_s17   ;;  %s2059_s16 = sphi %s2164_s16, %s2538_s16   ;;  %s2055_s15 = sphi %s2162_s15, %s2537_s15   ;;  %s2051_s30 = sphi %s2160_s30, %s2541_s30   ;;  %s2047_s29 = sphi %s2158_s29, %s2540_s29  }
   0x8   : > { %2517 = sst [smem:[#allocation13_spill]] %s2055_s15  ;;  %s1636_s20 = sadd.s32 4294967294, %s2067_s18  }
   0x9   : > { %2518 = sst [smem:[#allocation14_spill]] %s2063_s17  ;;  %s40_s21 = sadd.s32 1, %s2063_s17 }
   0xa   : > { %2519 = sst [smem:[#allocation15_spill]] %s2067_s18  ;;  %s353_s22 = sadd.s32 1, %s2055_s15 }
   0xb   : > { %p42_p0 = scmp.ge.s32.totalorder %s40_s21, 2  ;;  %p363_p1 = scmp.ne.s32.totalorder %s2055_s15, %s2051_s30 }
   0xc   : > { %p364_p2 = scmp.eq.s32.totalorder %s1635_s19, 1  ;;  %p369_p3 = scmp.ne.s32.totalorder %s2051_s30, %s2047_s29 }
   0xd   : > { %s2543_s21 = smov (%p42_p0, %s40_s21), 0  ;;  %p370_p5 = scmp.eq.s32.totalorder %s1636_s20, 1 }
   0xe   : > { %2520 = sst [smem:[#allocation16_spill]] %s2543_s21  ;;  %p2198_p4 = por %p364_p2, %p363_p1 }
   0xf   : > { %s348_s24 = ssub.s32 %s2063_s17, %s2543_s21  ;;  %p1637_p6 = scmp.ge.s32.totalorder %s2067_s18, 1 }
  0x10   : > { %s2521_s23 = scalar_select %p2198_p4, 1, 0 }
  0x11   : > { %p351_p7 = scmp.eq.s32.totalorder %s348_s24, 0  ;;  %p2205_p8 = por %p370_p5, %p369_p3 }
  0x12   : > { %p377_p9 = scmp.lt.s32.totalorder %s2067_s18, 3  ;;  %p2217_p11 = scmp.eq.s32.totalorder %s1635_s19, 0 }
  0x13   : > { %s2522_s25 = scalar_select %p2205_p8, 1, 0 }
  0x14   : > { %s2211_s26 = scalar_select %p351_p7, %s2055_s15, %s353_s22  }
  0x15   : > { %2523 = sst [smem:[#allocation17_spill]] %s2522_s25  ;;  %p2213_p10 = pnand %p1637_p6, %p377_p9 }
  0x16   : > { %2524 = sst [smem:[#allocation18_spill]] %s2211_s26  ;;  %s2069_s20 = smov [#allocation6]  }
  0x17   : > { %s2525_s27 = scalar_select %p2213_p10, 1, 0 }
  0x18   : > { %s2526_s28 = scalar_select %p2217_p11, 1, 0 }
  0x19   : > { %p1842_p12 = pneg %p2213_p10  ;;  %s407_s24 = sshll.u32 %s2069_s20, 4  ;;  %s408_s24 = int_to_ptr.vmem [resolvable:$true] %s407_s24 }
  0x1a   : > { %s2528_s8 = sld [smem:[#allocation19_spill]] }
  0x1b   : > { %p2225_p13 = pnand %p2217_p11, %p1842_p12 }
  0x1d   : > { %p1959_p1 = pneg %p2225_p13 }
  0x20   : > { %s1957_s26 = scalar_lea.hbm %s2528_s8, 256 }
  0x21   : > { %p1958_p0 = scmp.ne.s32.totalorder %s2528_s8, %s1957_s26  ;;  %p1964_p5 = scmp.lt.u32.totalorder %s1957_s26, %s2528_s8 }
  0x23   : > { %p1960_p2 = pnand %p1959_p1, %p1958_p0 }
  0x25   : > { %p1961_p3 = pneg %p1960_p2 }
  0x27   : > { %p1966_p6 = pnand %p1964_p5, %p1961_p3 }
  0x29   : > { %1969 = shalt.err (!%p1966_p6)
}
  0x2a   : > { %s1970_s29 = scalar_lea.vmem %s408_s24, 256  ;;  %p1978_p8 = scmp.lt.s32.totalorder %s408_s24, %s408_s24 }
  0x2b   : > { %p1971_p7 = scmp.ne.s32.totalorder %s408_s24, %s1970_s29  ;;  %p1979_p4 = scmp.lt.s32.totalorder %s1970_s29, %s1970_s29 }
  0x2d   : > { %p1973_p9 = pnand %p1971_p7, %p1959_p1  ;;  %p1980_p11 = por %p1979_p4, %p1978_p8 }
  0x2f   : > { %p1974_p12 = pneg %p1973_p9 }
  0x31   : > { %p1981_p10 = pnand %p1980_p11, %p1974_p12 }
  0x33   : > { %1984 = shalt.err (!%p1981_p10)
}
  0x34   : > { %s2070_s15 = smov 64   ;;  %s2071_s17 = smov 4  }
  0x35   : > { %1845 = dma.hbm_to_vmem [thread:$0]  (!%p2225_p13), %s2528_s8, 256, %s408_s24, [#allocation7], %s2070_s15, %s2070_s15, %s2071_s17  }
  0x36   : > { %p2529_p0 = scmp.ne.s32.totalorder %s2525_s27, 0 }
  0x37   : > { %p2530_p2 = scmp.ne.s32.totalorder (!%p2529_p0), %s2526_s28, 0 }
  0x38   : > { %451 = sbr.rel (%p2529_p0) target bundleno = 2744 (0xab8), region = 76 }
  0x3f   : > { %2038 = dma.done.wait (%p2530_p2), [#allocation7], 256  }
  0x40   : > { %2040 = vsyncadd (%p2530_p2), [#allocation7], 4294967040  ;;  %p499_p4 = scmp.lt.s32.totalorder %s2059_s16, 1  ;;  %v2072_v0 = vmov 0.0   ;;  %vm2073_vm0 = vmmov 0   ;;  %v1914_v1 = vld [vmem:[%s2491_s2] sm:$0xff]  }
  0x41   : > { %1736 = vmatprep.subr.bf16.mxu0 %v2072_v0  ;;  %1744 = vmatprep.subr.bf16.mxu1 %v2072_v0  ;;  %v1915_v2 = vld [vmem:[%s2491_s2 + $0x8] sm:$0xff]   ;;  %s2074_s17 = smov 96   ;;  %v1916_v3 = vld [vmem:[%s2491_s2] sm:$0xff]   ;;  %vm536_vm1 = vcmask 261120   ;;  %vm582_vm2 = vcmask 257024   ;;  %s2075_s8 = smov 120  }
  0x42   : > { %1740 = vmatprep.mubr.msk.bf16.mxu0 %vm2073_vm0, %v2072_v0  ;;  %s2257_s29 = scalar_select %p499_p4, %s2059_s16, 1  ;;  %1748 = vmatprep.mubr.msk.bf16.mxu1 %vm2073_vm0, %v2072_v0  ;;  %v1917_v4 = vld [vmem:[%s2491_s2 + $0x8] sm:$0xff]   ;;  %v2282_v6 = vld [vmem:[%s2492_s3] ss:$0 sm:$0xff]  ;;  %vm743_vm3 = vcmask 64512   ;;  %vm805_vm4 = vcmask 1043456  }
  0x43   : > { %604 = vrot.lane.b32.xlu0 %v1914_v1, %s2074_s17  ;;  %1737 = vmatpush3.bf16.msra.mxu0 %v1916_v3  ;;  %s2076_s18 = smov 112   ;;  %v1922_v31 = vld [vmem:[%s2491_s2] sm:$0xff]   ;;  %v1923_v32 = vld [vmem:[%s2491_s2 + $0x8] sm:$0xff]   ;;  %vm850_vm5 = vcmask 60416   ;;  %s2081_s27 = smov 24   ;;  %vm980_vm6 = vcmask 126016  }
  0x44   : > { %s1643_s21 = sshll.u32 %s2257_s29, 3  ;;  %1738 = vmatprep.subr.bf16.mxu0 %v2072_v0  ;;  %610 = vrot.lane.b32.xlu1 %v2282_v6, %s2074_s17  ;;  %s505_s19 = scalar_lea.vmem %s2490_s1, %s2257_s29  ;;  %vm1107_vm7 = vcmask 191616   ;;  %vm1234_vm8 = vcmask 257216   ;;  %vm1451_vm9 = vcmask 523264  }
  0x45   : > { %s502_s15 = scalar_lea.vmem %s2489_s0, %s1643_s21  ;;  %s2077_s21 = smov 104   ;;  %v1656_v44 = vld [vmem:[%s505_s19] ss:$0 sm:$0xff] }
  0x46   : > { %v2277_v5 = vld [vmem:[%s502_s15] sm:$0xff]  ;;  %s2078_s15 = smov 64   ;;  %s2079_s29 = smov 8  }
  0x47   : > { %606 = vrot.lane.b32.xlu0 %v1915_v2, %s2074_s17  ;;  %v2288_v7 = vpack.c.bf16 %v2277_v5, %v2277_v5  ;;  %1739 = vmatpush3.bf16.msra.mxu0 %v1917_v4  ;;  %s496_s17 = sand.u32 1, %s2051_s30   ;;  %p2531_p10 = scmp.ne.s32.totalorder %s2521_s23, 0 }
  0x48   : > { %1752 = vmatprep.subr.bf16.mxu0 %v2072_v0  ;;  %s1642_s22 = sshll.u32 %s496_s17, 3  ;;  %s1528_s20 = scalar_lea.sflag [#allocation8], %s496_s17 }
  0x4a   : > { %1741 = vmatmul.mubr.msk.bf16.vlgmr.msra.gmra.mrb[0].mxu0 %vm536_vm1, %v2288_v7 }
  0x4b   : > { %1756 = vmatprep.mubr.msk.bf16.mxu0 %vm2073_vm0, %v2072_v0 }
  0xb5   : > { %v605_v8 = vpop.permute.xlu0 %604 }
  0xb6   : > { %1745 = vmatpush3.bf16.msra.mxu1 %v605_v8  ;;  %v611_v19 = vpop.permute.xlu1 %610 }
  0xb7   : > { %1746 = vmatprep.subr.bf16.mxu1 %v2072_v0 }
  0xb9   : > { %v607_v9 = vpop.permute.xlu0 %606 }
  0xba   : > { %1747 = vmatpush3.bf16.msra.mxu1 %v607_v9 }
  0xbb   : > { %1760 = vmatprep.subr.bf16.mxu1 %v2072_v0 }
  0xbd   : > { %1749 = vmatmul.mubr.msk.bf16.vlgmr.msra.gmra.mrb[0].mxu1 %vm536_vm1, %v2288_v7 }
  0xbe   : > { %1762 = vmatprep.mubr.msk.bf16.mxu1 %vm2073_vm0, %v2072_v0 }
 0x11d   : > { %v574_v10 = vpop.f32.mrb[0].mxu0 }
 0x11e   : > { %v575_v11 = vadd.f32 %v2282_v6, %v574_v10  ;;  %v1742_v12 = vpop.f32.mrb[1].mxu0 }
 0x11f   : > { %v577_v13 = vpop.f32.mrb[2].mxu0 }
 0x120   : > { %v580_v14 = vmul.f32 0.35355338, %v575_v11  ;;  %v1743_v15 = vpop.f32.mrb[3].mxu0 }
 0x122   : > { %v581_v16 = vpack.c.bf16 %v580_v14, %v580_v14 }
 0x124   : > { %583 = vst.msk [vmem:[#allocation2] sm:$0xf] %vm582_vm2, %v581_v16 }
 0x12b   : > { %v740_v17 = vld [vmem:[#allocation2] sm:$0xf] }
 0x12c   : > { %v1659_v18 = vcombine.low %v740_v17, %v740_v17 }
 0x12e   : > { %857 = vrot.lane.b32.xlu0 %v1659_v18, %s2075_s8 }
 0x132   : > { %984 = vrot.lane.b32.xlu0 %v1659_v18, %s2076_s18 }
 0x136   : > { %1111 = vrot.lane.b32.xlu0 %v1659_v18, %s2077_s21 }
 0x13a   : > { %677 = vrot.lane.b32.xlu0 %v1923_v32, %s2078_s15 }
 0x190   : > { %v647_v20 = vpop.f32.mrb[0].mxu1 }
 0x191   : > { %v648_v21 = vadd.f32 %v647_v20, %v611_v19  ;;  %v1750_v22 = vpop.f32.mrb[1].mxu1 }
 0x192   : > { %v650_v23 = vpop.f32.mrb[2].mxu1 }
 0x193   : > { %v653_v24 = vpack.c.bf16 %v648_v21, %v648_v21  ;;  %v1751_v25 = vpop.f32.mrb[3].mxu1 }
 0x195   : > { %654 = vst.msk [vmem:[#allocation3] sm:$0xf] %vm582_vm2, %v653_v24 }
 0x19c   : > { %v741_v26 = vld [vmem:[#allocation3] sm:$0xf] }
 0x19d   : > { %v1918_v27 = vld [vmem:[#allocation3] ss:$0 sps:$4 sm:$0xff]   ;;  %v748_v28 = vsel %vm743_vm3, %v741_v26, 0 }
 0x19e   : > { %1761 = vmatpush3.bf16.xpose.msra.mxu1 %v748_v28  ;;  %862 = vrot.lane.b32.xlu1 %v1918_v27, %s2075_s8  ;;  %v1920_v29 = vld [vmem:[#allocation3] ss:$0 sps:$4 sm:$0xff]  }
 0x19f   : > { %1772 = vmatprep.subr.bf16.mxu1 %v2072_v0  ;;  %v1921_v30 = vld [vmem:[#allocation3] ss:$0 sps:$4 sm:$0xff]  }
 0x1a0   : > { %v858_v34 = vpop.permute.xlu0 %857 }
 0x1a2   : > { %989 = vrot.lane.b32.xlu1 %v1920_v29, %s2076_s18 }
 0x1a4   : > { %v985_v37 = vpop.permute.xlu0 %984 }
 0x1a5   : > { %1763 = vmatmul.mubr.msk.bf16.vlgmr.msra.gmra.mrb[4].mxu1 %vm743_vm3, %v740_v17 }
 0x1a6   : > { %1116 = vrot.lane.b32.xlu1 %v1921_v30, %s2077_s21  ;;  %1774 = vmatprep.mubr.msk.bf16.mxu1 %vm2073_vm0, %v2072_v0 }
 0x1a8   : > { %v1112_v40 = vpop.permute.xlu0 %1111 }
 0x1aa   : > { %675 = vrot.lane.b32.xlu1 %v1922_v31, %s2078_s15 }
 0x1ac   : > { %v678_v42 = vpop.permute.xlu0 %677 }
 0x210   : > { %v863_v33 = vpop.permute.xlu1 %862 }
 0x211   : > { %v868_v35 = vsel %vm743_vm3, %v863_v33, 0 }
 0x212   : > { %1773 = vmatpush3.bf16.xpose.msra.mxu1 %v868_v35 }
 0x213   : > { %1784 = vmatprep.subr.bf16.mxu1 %v2072_v0 }
 0x214   : > { %v990_v36 = vpop.permute.xlu1 %989 }
 0x215   : > { %v995_v38 = vsel %vm743_vm3, %v990_v36, 0 }
 0x218   : > { %v1117_v39 = vpop.permute.xlu1 %1116 }
 0x219   : > { %1775 = vmatmul.mubr.msk.bf16.vlgmr.msra.gmra.mrb[8].mxu1 %vm743_vm3, %v858_v34  ;;  %v1122_v43 = vsel %vm743_vm3, %v1117_v39, 0 }
 0x21a   : > { %1785 = vmatpush3.bf16.xpose.msra.mxu1 %v995_v38  ;;  %1786 = vmatprep.mubr.msk.bf16.mxu1 %vm2073_vm0, %v2072_v0 }
 0x21b   : > { %1796 = vmatprep.subr.bf16.mxu1 %v2072_v0 }
 0x21c   : > { %v676_v41 = vpop.permute.xlu1 %675 }
 0x21d   : > { %1753 = vmatpush3.bf16.msra.mxu0 %v676_v41 }
 0x21e   : > { %1754 = vmatprep.subr.bf16.mxu0 %v2072_v0 }
 0x221   : > { %1787 = vmatmul.mubr.msk.bf16.vlgmr.msra.gmra.mrb[12].mxu1 %vm743_vm3, %v985_v37  ;;  %1755 = vmatpush3.bf16.msra.mxu0 %v678_v42 }
 0x222   : > { %1797 = vmatpush3.bf16.xpose.msra.mxu1 %v1122_v43  ;;  %1798 = vmatprep.mubr.msk.bf16.mxu1 %vm2073_vm0, %v2072_v0 }
 0x223   : > { %1808 = vmatprep.subr.bf16.mxu1 %v2072_v0  ;;  %1766 = vmatprep.subr.bf16.mxu0 %v2072_v0 }
 0x224   : > { %1757 = vmatmul.mubr.msk.bf16.vlgmr.msra.gmra.mrb[4].mxu0 %vm536_vm1, %v2288_v7 }
 0x225   : > { %1768 = vmatprep.mubr.msk.bf16.mxu0 %vm2073_vm0, %v2072_v0 }
 0x229   : > { %1799 = vmatmul.mubr.msk.bf16.vlgmr.msra.gmra.mrb[16].mxu1 %vm743_vm3, %v1112_v40 }
 0x22a   : > { %1812 = vmatprep.mubr.msk.bf16.mxu1 %vm2073_vm0, %v2072_v0 }
 0x278   : > { %v784_v45 = vpop.f32.mrb[4].mxu1 }
 0x279   : > { %v785_v46 = vadd.f32 %v1656_v44, %v784_v45  ;;  %v1764_v47 = vpop.f32.mrb[5].mxu1 }
 0x27a   : > { %v787_v48 = vpop.f32.mrb[6].mxu1 }
 0x27b   : > { %v1765_v49 = vpop.f32.mrb[7].mxu1  ;;  %v790_v50 = vsel %vm743_vm3, %v785_v46, -inf }
 0x27c   : > { %791 = vmax.xlane.f32.xlu1 %v790_v50 }
 0x2ec   : > { %v904_v51 = vpop.f32.mrb[8].mxu1 }
 0x2ed   : > { %v905_v52 = vadd.f32 %v1656_v44, %v904_v51  ;;  %v1776_v53 = vpop.f32.mrb[9].mxu1 }
 0x2ee   : > { %v907_v54 = vpop.f32.mrb[10].mxu1 }
 0x2ef   : > { %v1777_v55 = vpop.f32.mrb[11].mxu1  ;;  %v910_v56 = vsel %vm743_vm3, %v905_v52, -inf }
 0x2f0   : > { %911 = vmax.xlane.f32.xlu0 %v910_v56 }
 0x2f4   : > { %v1031_v57 = vpop.f32.mrb[12].mxu1 }
 0x2f5   : > { %v1032_v58 = vadd.f32 %v1656_v44, %v1031_v57  ;;  %v1788_v59 = vpop.f32.mrb[13].mxu1 }
 0x2f6   : > { %v1034_v60 = vpop.f32.mrb[14].mxu1 }
 0x2f7   : > { %v1789_v61 = vpop.f32.mrb[15].mxu1  ;;  %v1037_v62 = vsel %vm743_vm3, %v1032_v58, -inf  ;;  %v718_v13 = vpop.f32.mrb[4].mxu0 }
 0x2f8   : > { %1038 = vmax.xlane.f32.xlu0 %v1037_v62  ;;  %v1758_v14 = vpop.f32.mrb[5].mxu0 }
 0x2f9   : > { %v721_v15 = vpop.f32.mrb[6].mxu0 }
 0x2fa   : > { %v1759_v16 = vpop.f32.mrb[7].mxu0 }
 0x2fc   : > { %v1158_v63 = vpop.f32.mrb[16].mxu1 }
 0x2fd   : > { %v1159_v1 = vadd.f32 %v1656_v44, %v1158_v63  ;;  %v1800_v2 = vpop.f32.mrb[17].mxu1 }
 0x2fe   : > { %v1161_v3 = vpop.f32.mrb[18].mxu1 }
 0x2ff   : > { %v1801_v4 = vpop.f32.mrb[19].mxu1  ;;  %v1164_v7 = vsel %vm743_vm3, %v1159_v1, -inf }
 0x300   : > { %1165 = vmax.xlane.f32.xlu1 %v1164_v7 }
 0x309   : > { %v792_v8 = vpop.xlane.xlu1 %791 }
 0x30a   : > { %v793_v9 = vsub.f32 %v785_v46, %v792_v8 }
 0x30c   : > { %v794_v10 = vmul.f32 1.442695, %v793_v9 }
 0x30e   : > { %1935 = vpow2.f32 %v794_v10  ;;  %681 = vrot.lane.b32.xlu0 %v2282_v6, %s2078_s15  ;;  %v1927_v10 = vld [vmem:[%s2493_s4] sm:$0xff]  }
 0x30f   : > { %1809 = vmatpush3.bf16.msra.mxu1 %v1927_v10 }
 0x310   : > { %1810 = vmatprep.subr.bf16.mxu1 %v2072_v0 }
 0x318   : > { %v1936_v11 = vpop.eup %1935 }
 0x319   : > { %v796_v12 = vsel %vm743_vm3, %v1936_v11, 0.0 }
 0x31a   : > { %797 = vadd.xlane.f32.xlu1 %v796_v12  ;;  %v1928_v12 = vld [vmem:[%s2493_s4 + $0x8] sm:$0xff]  }
 0x31b   : > { %1811 = vmatpush3.bf16.msra.mxu1 %v1928_v12 }
 0x31c   : > { %1824 = vmatprep.subr.bf16.mxu1 %v2072_v0 }
 0x37d   : > { %v912_v17 = vpop.xlane.xlu0 %911 }
 0x37e   : > { %v913_v18 = vsub.f32 %v905_v52, %v912_v17 }
 0x380   : > { %v914_v19 = vmul.f32 1.442695, %v913_v18 }
 0x382   : > { %1937 = vpow2.f32 %v914_v19 }
 0x385   : > { %v1039_v20 = vpop.xlane.xlu0 %1038 }
 0x386   : > { %v1040_v21 = vsub.f32 %v1032_v58, %v1039_v20 }
 0x388   : > { %v1041_v22 = vmul.f32 1.442695, %v1040_v21 }
 0x389   : > { %v682_v23 = vpop.permute.xlu0 %681 }
 0x38a   : > { %1939 = vpow2.f32 %v1041_v22  ;;  %v719_v24 = vadd.f32 %v718_v13, %v682_v23 }
 0x38c   : > { %v1938_v25 = vpop.eup %1937  ;;  %v724_v6 = vpack.c.bf16 %v719_v24, %v719_v24 }
 0x38d   : > { %v1166_v26 = vpop.xlane.xlu1 %1165  ;;  %v916_v27 = vsel %vm743_vm3, %v1938_v25, 0.0 }
 0x38e   : > { %v1167_v28 = vsub.f32 %v1159_v1, %v1166_v26  ;;  %917 = vadd.xlane.f32.xlu1 %v916_v27  ;;  %725 = vst.msk [vmem:[#allocation4] sm:$0xf] %vm582_vm2, %v724_v6  ;;  %v1675_v6 = vld [vmem:[%s2494_s5] ss:$0 sm:$0xff] }
 0x390   : > { %v1168_v29 = vmul.f32 1.442695, %v1167_v28 }
 0x392   : > { %1941 = vpow2.f32 %v1168_v29 }
 0x394   : > { %v1940_v30 = vpop.eup %1939 }
 0x395   : > { %v1043_v31 = vsel %vm743_vm3, %v1940_v30, 0.0  ;;  %v742_v32 = vld [vmem:[#allocation4] sm:$0xf] }
 0x396   : > { %1044 = vadd.xlane.f32.xlu1 %v1043_v31  ;;  %v807_v33 = vsel %vm805_vm4, %v742_v32, 0  ;;  %v1924_v34 = vld [vmem:[#allocation4] ss:$0 sps:$4 sm:$0xff]  }
 0x397   : > { %1767 = vmatpush3.bf16.msra.mxu0 %v807_v33  ;;  %1052 = vrot.lane.b32.xlu0 %v1924_v34, %s2076_s18  ;;  %v1925_v35 = vld [vmem:[#allocation4] ss:$0 sps:$4 sm:$0xff]   ;;  %s498_s18 = scalar_lea.vmem [#allocation9], %s1642_s22 }
 0x398   : > { %1778 = vmatprep.subr.bf16.mxu0 %v2072_v0  ;;  %v1926_v39 = vld [vmem:[#allocation4] ss:$0 sps:$4 sm:$0xff]  }
 0x39b   : > { %1179 = vrot.lane.b32.xlu0 %v1925_v35, %s2077_s21  ;;  %s2080_s21 = smov 16  }
 0x39c   : > { %v1942_v36 = vpop.eup %1941 }
 0x39d   : > { %v1170_v37 = vsel %vm743_vm3, %v1942_v36, 0.0 }
 0x39e   : > { %1171 = vadd.xlane.f32.xlu1 %v1170_v37 }
 0x3a7   : > { %v798_v38 = vpop.xlane.xlu1 %797 }
 0x3a8   : > { %1943 = vrcp.f32 %v798_v38  ;;  %v1929_v38 = vld [vmem:[#allocation6] sm:$0xff]  }
 0x3af   : > { %925 = vrot.lane.b32.xlu1 %v1926_v39, %s2075_s8  ;;  %v1930_v39 = vld [vmem:[#allocation6 + $0x8] sm:$0xff]   ;;  %s1694_s8 = sshll.u32 %s2059_s16, 7  ;;  %s2082_s16 = smov [#allocation9]  }
 0x3b0   : > { %s2441_s24 = scalar_lea.hbm %s2503_s14, %s1694_s8  ;;  %s1989_s22 = sshll.u32 %s2082_s16, 4  ;;  %s1990_s22 = int_to_ptr.vmem [resolvable:$false] %s1989_s22 }
 0x3b1   : > { %s1991_s19 = scalar_lea.vmem %s1990_s22, 256 }
 0x3b2   : > { %v1944_v40 = vpop.eup %1943 }
 0x3b3   : > { %v800_v41 = vmul.f32 %v1944_v40, %v1936_v11 }
 0x3b5   : > { %v801_v42 = vpack.c.bf16 %v800_v41, %v800_v41 }
 0x3b7   : > { %1769 = vmatmul.mubr.msk.bf16.vlgmr.msra.gmra.mrb[8].mxu0 %vm743_vm3, %v801_v42 }
 0x3b8   : > { %1780 = vmatprep.mubr.msk.bf16.mxu0 %vm2073_vm0, %v2072_v0 }
 0x409   : > { %v1053_v52 = vpop.permute.xlu0 %1052 }
 0x40a   : > { %v1058_v53 = vsel %vm805_vm4, %v1053_v52, 0  ;;  %v1934_v52 = vld [vmem:[%s2499_s10 + $0x18] sm:$0xff]  }
 0x40d   : > { %v1180_v55 = vpop.permute.xlu0 %1179 }
 0x40e   : > { %v1185_v58 = vsel %vm805_vm4, %v1180_v55, 0 }
 0x41b   : > { %v918_v43 = vpop.xlane.xlu1 %917 }
 0x41c   : > { %1945 = vrcp.f32 %v918_v43  ;;  %v1679_v43 = vld [vmem:[%s2495_s6] ss:$0 sm:$0xff] }
 0x423   : > { %v1045_v44 = vpop.xlane.xlu1 %1044 }
 0x424   : > { %1947 = vrcp.f32 %v1045_v44 }
 0x426   : > { %v1946_v45 = vpop.eup %1945 }
 0x427   : > { %v920_v47 = vmul.f32 %v1946_v45, %v1938_v25  ;;  %v1680_v45 = vld [vmem:[%s2496_s7] ss:$0 sm:$0xff] }
 0x429   : > { %v921_v50 = vpack.c.bf16 %v920_v47, %v920_v47 }
 0x42b   : > { %v1172_v46 = vpop.xlane.xlu1 %1171 }
 0x42c   : > { %1949 = vrcp.f32 %v1172_v46 }
 0x42e   : > { %v1948_v51 = vpop.eup %1947 }
 0x42f   : > { %v926_v48 = vpop.permute.xlu1 %925  ;;  %v1047_v54 = vmul.f32 %v1948_v51, %v1940_v30  ;;  %v1933_v51 = vld [vmem:[%s2499_s10 + $0x10] sm:$0xff]  }
 0x430   : > { %v931_v49 = vsel %vm805_vm4, %v926_v48, 0 }
 0x431   : > { %1779 = vmatpush3.bf16.msra.mxu0 %v931_v49  ;;  %v1048_v56 = vpack.c.bf16 %v1047_v54, %v1047_v54  ;;  %v1931_v49 = vld [vmem:[%s2499_s10] sm:$0xff]  }
 0x432   : > { %1790 = vmatprep.subr.bf16.mxu0 %v2072_v0 }
 0x434   : > { %1781 = vmatmul.mubr.msk.bf16.vlgmr.msra.gmra.mrb[12].mxu0 %vm743_vm3, %v921_v50  ;;  %v1932_v50 = vld [vmem:[%s2499_s10 + $0x8] sm:$0xff]  }
 0x435   : > { %1791 = vmatpush3.bf16.msra.mxu0 %v1058_v53  ;;  %1792 = vmatprep.mubr.msk.bf16.mxu0 %vm2073_vm0, %v2072_v0  ;;  %v1682_v53 = vld [vmem:[%s2498_s9] ss:$0 sm:$0xff] }
 0x436   : > { %1802 = vmatprep.subr.bf16.mxu0 %v2072_v0  ;;  %v1950_v57 = vpop.eup %1949 }
 0x437   : > { %v1174_v59 = vmul.f32 %v1950_v57, %v1942_v36 }
 0x439   : > { %v1175_v60 = vpack.c.bf16 %v1174_v59, %v1174_v59 }
 0x43c   : > { %1793 = vmatmul.mubr.msk.bf16.vlgmr.msra.gmra.mrb[16].mxu0 %vm743_vm3, %v1048_v56 }
 0x43d   : > { %1803 = vmatpush3.bf16.msra.mxu0 %v1185_v58  ;;  %1804 = vmatprep.mubr.msk.bf16.mxu0 %vm2073_vm0, %v2072_v0 }
 0x43e   : > { %1816 = vmatprep.subr.bf16.mxu0 %v2072_v0 }
 0x444   : > { %1805 = vmatmul.mubr.msk.bf16.vlgmr.msra.gmra.mrb[20].mxu0 %vm743_vm3, %v1175_v60 }
 0x445   : > { %1820 = vmatprep.mubr.msk.bf16.mxu0 %vm2073_vm0, %v2072_v0  ;;  %1817 = vmatpush3.bf16.msra.mxu0 %v1929_v38 }
 0x446   : > { %1818 = vmatprep.subr.bf16.mxu0 %v2072_v0 }
 0x449   : > { %1819 = vmatpush3.bf16.msra.mxu0 %v1930_v39 }
 0x48a   : > { %v843_v61 = vpop.f32.mrb[8].mxu0 }
 0x48b   : > { %v849_v62 = vpack.c.bf16 %v843_v61, %v843_v61  ;;  %v1770_v63 = vpop.f32.mrb[9].mxu0 }
 0x48c   : > { %v846_v1 = vpop.f32.mrb[10].mxu0 }
 0x48d   : > { %851 = vst.msk [vmem:[#allocation5] sm:$0xf] %vm850_vm5, %v849_v62  ;;  %v1771_v2 = vpop.f32.mrb[11].mxu0 }
 0x507   : > { %v967_v3 = vpop.f32.mrb[12].mxu0 }
 0x508   : > { %v1697_v4 = vpack.c.bf16 %v967_v3, %v967_v3  ;;  %v1782_v7 = vpop.f32.mrb[13].mxu0 }
 0x509   : > { %v970_v8 = vpop.f32.mrb[14].mxu0  ;;  %v1681_v7 = vld [vmem:[%s2500_s11] ss:$0 sm:$0xff] }
 0x50a   : > { %977 = vrot.lane.b32.xlu0 %v1697_v4, %s2079_s29  ;;  %v1783_v9 = vpop.f32.mrb[15].mxu0 }
 0x50f   : > { %v1094_v11 = vpop.f32.mrb[16].mxu0 }
 0x510   : > { %v1698_v13 = vpack.c.bf16 %v1094_v11, %v1094_v11  ;;  %v1794_v14 = vpop.f32.mrb[17].mxu0 }
 0x511   : > { %v1097_v15 = vpop.f32.mrb[18].mxu0 }
 0x512   : > { %1104 = vrot.lane.b32.xlu0 %v1698_v13, %s2080_s21  ;;  %v1795_v16 = vpop.f32.mrb[19].mxu0  ;;  %s1542_s21 = sshll.u32 %s498_s18, 4  ;;  %s2443_s21 = int_to_ptr.vmem [resolvable:$true] %s1542_s21 }
 0x513   : > { %s1985_s15 = scalar_lea.vmem %s2443_s21, 128  ;;  %p1992_p1 = scmp.lt.s32.totalorder %s2443_s21, %s1990_s22 }
 0x514   : > { %p1986_p8 = scmp.ne.s32.totalorder %s2443_s21, %s1985_s15  ;;  %p1993_p3 = scmp.lt.s32.totalorder %s1991_s19, %s1985_s15 }
 0x516   : > { %p1987_p11 = pnand %p1986_p8, %p2531_p10  ;;  %p1994_p5 = por %p1993_p3, %p1992_p1 }
 0x517   : > { %v1221_v17 = vpop.f32.mrb[20].mxu0 }
 0x518   : > { %v1699_v18 = vpack.c.bf16 %v1221_v17, %v1221_v17  ;;  %v1806_v19 = vpop.f32.mrb[21].mxu0  ;;  %p1988_p13 = pneg %p1987_p11 }
 0x519   : > { %v1224_v20 = vpop.f32.mrb[22].mxu0 }
 0x51a   : > { %1231 = vrot.lane.b32.xlu1 %v1699_v18, %s2081_s27  ;;  %v1807_v21 = vpop.f32.mrb[23].mxu0  ;;  %p1995_p6 = pnand %p1994_p5, %p1988_p13 }
 0x57c   : > { %v978_v22 = vpop.permute.xlu0 %977 }
 0x57d   : > { %981 = vst.msk [vmem:[#allocation5] sm:$0xf] %vm980_vm6, %v978_v22 }
 0x584   : > { %v1105_v23 = vpop.permute.xlu0 %1104 }
 0x585   : > { %1108 = vst.msk [vmem:[#allocation5] sm:$0xf] %vm1107_vm7, %v1105_v23 }
 0x58c   : > { %v1232_v24 = vpop.permute.xlu1 %1231 }
 0x58d   : > { %1235 = vst.msk [vmem:[#allocation5] sm:$0xf] %vm1234_vm8, %v1232_v24  ;;  %v1691_v24 = vld [vmem:[%s2501_s12] ss:$0 sm:$0xff] }
 0x594   : > { %v1236_v25 = vld [vmem:[#allocation5] sm:$0xf] }
 0x595   : > { %1813 = vmatmul.mubr.msk.bf16.vlgmr.msra.gmra.mrb[20].mxu1 %vm536_vm1, %v1236_v25 }
 0x596   : > { %1832 = vmatprep.mubr.msk.bf16.mxu1 %vm2073_vm0, %v2072_v0  ;;  %1825 = vmatpush3.bf16.msra.mxu1 %v1931_v49 }
 0x597   : > { %1826 = vmatprep.subr.bf16.mxu1 %v2072_v0 }
 0x59a   : > { %1827 = vmatpush3.bf16.msra.mxu1 %v1932_v50 }
 0x59b   : > { %1828 = vmatprep.subr.bf16.mxu1 %v2072_v0 }
 0x59e   : > { %1829 = vmatpush3.bf16.msra.mxu1 %v1933_v51 }
 0x59f   : > { %1830 = vmatprep.subr.bf16.mxu1 %v2072_v0 }
 0x5a2   : > { %1831 = vmatpush3.bf16.msra.mxu1 %v1934_v52 }
 0x668   : > { %v1298_v26 = vpop.f32.mrb[20].mxu1 }
 0x669   : > { %v1299_v27 = vadd.f32 %v1675_v6, %v1298_v26  ;;  %v1814_v28 = vpop.f32.mrb[21].mxu1  ;;  %v1692_v6 = vld [vmem:[%s2502_s13] ss:$0 sm:$0xff] }
 0x66a   : > { %v1301_v29 = vpop.f32.mrb[22].mxu1 }
 0x66b   : > { %v1815_v30 = vpop.f32.mrb[23].mxu1  ;;  %v1304_v31 = vadd.f32 %v1299_v27, %v2277_v5 }
 0x66d   : > { %v1305_v32 = vsel %vm536_vm1, %v1304_v31, 0.0 }
 0x66e   : > { %1306 = vadd.xlane.f32.xlu0 %v1305_v32 }
 0x6fb   : > { %v1307_v33 = vpop.xlane.xlu0 %1306 }
 0x6fc   : > { %v1309_v34 = vmul.f32 0.03125, %v1307_v33 }
 0x6fe   : > { %v1310_v35 = vsub.f32 %v1304_v31, %v1309_v34 }
 0x700   : > { %v1311_v36 = vmul.f32 %v1310_v35, %v1310_v35 }
 0x702   : > { %v1312_v37 = vsel %vm536_vm1, %v1311_v36, 0.0 }
 0x703   : > { %1313 = vadd.xlane.f32.xlu1 %v1312_v37 }
 0x790   : > { %v1314_v40 = vpop.xlane.xlu1 %1313 }
 0x791   : > { %v1315_v41 = vmul.f32 0.03125, %v1314_v40 }
 0x793   : > { %v1316_v42 = vadd.f32 1e-12, %v1315_v41 }
 0x795   : > { %1951 = vrsqrt.f32 %v1316_v42 }
 0x79f   : > { %v1952_v5 = vpop.eup %1951 }
 0x7a0   : > { %v1318_v44 = vmul.f32 %v1952_v5, %v1310_v35 }
 0x7a2   : > { %v1326_v46 = vmul.f32 %v1679_v43, %v1318_v44 }
 0x7a4   : > { %v1334_v47 = vadd.f32 %v1680_v45, %v1326_v46 }
 0x7a6   : > { %v1335_v48 = vpack.c.bf16 %v1334_v47, %v1334_v47 }
 0x7a8   : > { %1821 = vmatmul.mubr.msk.bf16.vlgmr.msra.gmra.mrb[24].mxu0 %vm536_vm1, %v1335_v48 }
 0x87b   : > { %v1403_v54 = vpop.f32.mrb[24].mxu0 }
 0x87c   : > { %v1404_v55 = vadd.f32 %v1682_v53, %v1403_v54  ;;  %v1822_v56 = vpop.f32.mrb[25].mxu0 }
 0x87d   : > { %v1406_v57 = vpop.f32.mrb[26].mxu0 }
 0x87e   : > { %v1409_v58 = vmul.f32 %v1404_v55, %v1404_v55  ;;  %v1823_v59 = vpop.f32.mrb[27].mxu0  ;;  %v1414_v1 = vmul.f32 0.5, %v1404_v55 }
 0x880   : > { %v1410_v60 = vmul.f32 %v1409_v58, %v1404_v55 }
 0x882   : > { %v1411_v61 = vmul.f32 0.044715, %v1410_v60 }
 0x884   : > { %v1412_v62 = vadd.f32 %v1411_v61, %v1404_v55 }
 0x886   : > { %v1413_v63 = vmul.f32 0.7978846, %v1412_v62 }
 0x888   : > { %1953 = vtanh.f32 %v1413_v63 }
 0x892   : > { %v1954_v0 = vpop.eup %1953 }
 0x893   : > { %v1416_v2 = vadd.f32 1.0, %v1954_v0 }
 0x895   : > { %v1417_v3 = vmul.f32 %v1416_v2, %v1414_v1 }
 0x897   : > { %v1418_v4 = vpack.c.bf16 %v1417_v3, %v1417_v3 }
 0x899   : > { %1833 = vmatmul.mubr.msk.bf16.vlgmr.msra.gmra.mrb[24].mxu1 %vm1451_vm9, %v1418_v4 }
 0x96c   : > { %v1489_v8 = vpop.f32.mrb[24].mxu1 }
 0x96d   : > { %v1495_v9 = vadd.f32 %v1681_v7, %v1489_v8  ;;  %v1834_v10 = vpop.f32.mrb[25].mxu1 }
 0x96e   : > { %v1492_v11 = vpop.f32.mrb[26].mxu1 }
 0x96f   : > { %v1835_v12 = vpop.f32.mrb[27].mxu1  ;;  %v1496_v13 = vadd.f32 %v1495_v9, %v1334_v47 }
 0x971   : > { %v1497_v14 = vsel %vm536_vm1, %v1496_v13, 0.0 }
 0x972   : > { %1498 = vadd.xlane.f32.xlu0 %v1497_v14 }
 0x9ff   : > { %v1499_v15 = vpop.xlane.xlu0 %1498 }
 0xa00   : > { %v1500_v16 = vmul.f32 0.03125, %v1499_v15 }
 0xa02   : > { %v1501_v17 = vsub.f32 %v1496_v13, %v1500_v16 }
 0xa04   : > { %v1502_v18 = vmul.f32 %v1501_v17, %v1501_v17 }
 0xa06   : > { %v1503_v19 = vsel %vm536_vm1, %v1502_v18, 0.0 }
 0xa07   : > { %1504 = vadd.xlane.f32.xlu0 %v1503_v19 }
 0xa94   : > { %v1505_v20 = vpop.xlane.xlu0 %1504 }
 0xa95   : > { %v1506_v21 = vmul.f32 0.03125, %v1505_v20 }
 0xa97   : > { %v1507_v22 = vadd.f32 1e-12, %v1506_v21 }
 0xa99   : > { %1955 = vrsqrt.f32 %v1507_v22 }
 0xaa3   : > { %v1956_v23 = vpop.eup %1955 }
 0xaa4   : > { %v1509_v25 = vmul.f32 %v1956_v23, %v1501_v17 }
 0xaa6   : > { %v1517_v26 = vmul.f32 %v1691_v24, %v1509_v25 }
 0xaa8   : > { %v1525_v27 = vadd.f32 %v1692_v6, %v1517_v26 }
 0xaaa   : > { %1526 = vst.msk [vmem:[%s498_s18] sm:$0xff] %vm536_vm1, %v1525_v27 }
 0xaab   : > { %1998 = shalt.err (!%p1995_p6)
}
 0xaac   : > { %s1999_s17 = scalar_lea.hbm %s2441_s24, 128  ;;  %s2003_s26 = scalar_lea.hbm %s2503_s14, 256 }
 0xaad   : > { %p2000_p7 = scmp.ne.s32.totalorder %s2441_s24, %s1999_s17  ;;  %p2004_p0 = scmp.lt.u32.totalorder %s2441_s24, %s2503_s14 }
 0xaae   : > { %p2005_p2 = scmp.lt.u32.totalorder %s2003_s26, %s1999_s17  ;;  %p2007_p8 = scmp.lt.u32.totalorder %s1999_s17, %s2441_s24 }
 0xaaf   : > { %p2001_p9 = pnand %p2000_p7, %p2531_p10 }
 0xab0   : > { %p2006_p4 = por %p2005_p2, %p2004_p0 }
 0xab1   : > { %p2002_p12 = pneg %p2001_p9 }
 0xab2   : > { %p2008_p11 = por %p2007_p8, %p2006_p4 }
 0xab4   : > { %p2009_p13 = pnand %p2008_p11, %p2002_p12 }
 0xab6   : > { %2012 = shalt.err (!%p2009_p13)
}
 0xab7   : > { %1840 = dma.vmem_to_hbm [thread:$0]  (%p2531_p10), %s2443_s21, 128, %s2441_s24, %s1528_s20  }
 0xab8 PF: > { %s2532_s27 = sld [smem:[#allocation15_spill]]  ;;  %s2533_s28 = sld [smem:[#allocation12_spill]] }
 0xab9   : > { %s2534_s15 = sld [smem:[#allocation17_spill]] }
 0xabe   : > { %p1852_p1 = scmp.ge.s32.totalorder %s2532_s27, 2  ;;  %s1554_s16 = sand.u32 1, %s2533_s28  }
 0xabf   : > { %p2535_p3 = scmp.ne.s32.totalorder %s2534_s15, 0  ;;  %s1555_s22 = scalar_lea.sflag [#allocation8], %s1554_s16 }
 0xac1   : > { %p1847_p5 = pnand %p1852_p1, %p2535_p3 }
 0xac3   : > { %2042 = dma.done.wait (!%p1847_p5), %s1555_s22, 128  }
 0xac4   : > { %2044 = vsyncadd (!%p1847_p5), %s1555_s22, 4294967168  ;;  %s28_s18 = sadd.s32 1, %s2532_s27   ;;  %s2536_s19 = sld [smem:[#allocation13_spill]] }
 0xac5   : > { %p25_p6 = scmp.ge.s32.totalorder %s28_s18, 4   ;;  %s2537_s15 = sld [smem:[#allocation18_spill]] }
 0xac6   : > { %s2538_s16 = sld [smem:[#allocation14_spill]]  ;;  %s2539_s17 = sld [smem:[#allocation16_spill]] }
 0xac7   : > { %s2540_s29 = smov %s2051_s30  ;;  %27 = sbr.rel (!%p25_p6) target bundleno = 7 (0x7), region = 125 }
 0xaca   : > { %s2541_s30 = smov %s2536_s19 }
 0xace   :  { %1560 = vsyncpa [#allocation7], 1 }
 0xacf   :  { %1562 = vsyncpa [#allocation7 + $0x1], 1 }
 0xad0   :  { %1563 = vsyncpa [#allocation8], 1 }
 0xad1   :  { %1565 = vsyncpa [#allocation8 + $0x1], 1 }

</bundles_post_ra>
